<compile_context>
chip_gen: v6e
topology: v6e:2x2x1
jax: 0.10.0
libtpu: 0.0.40
codegen_flags: <defaults>
</compile_context>

<pallas_src>
import functools
import math

import jax
import jax.numpy as jnp
from jax.experimental import pallas as pl
from jax.experimental.pallas import tpu as pltpu

VMEM_SPEC = pl.BlockSpec(memory_space=pltpu.MemorySpace.VMEM)
_VMEM_LIMIT = 48 * 1024 * 1024   # sized for v7x's 64 MiB VMEM with compiler headroom


def _pick_tile(dim, cap, align):
    """Largest tile <= cap that evenly divides dim, stepping by `align`
    (align=128 for lane dims, 16 for bf16 sublane dims). Falls back to the full dim."""
    if dim <= cap:
        return dim
    t = (cap // align) * align
    while t >= align:
        if dim % t == 0:
            return t
        t -= align
    return dim


def _apply_activation(y, activation):
    if activation == "relu":
        return jnp.maximum(y, 0.0)
    if activation == "gelu":
        # TODO(synk): HF BERT uses exact (erf) GELU; tanh-approximate GELU used here.
        return jax.nn.gelu(y, approximate=True)
    if activation == "tanh":
        return jnp.tanh(y)
    return y


# ----------------------------------------------------------------------------
# Tiled linear: o = act(x @ w + b)   (bias + activation fused into the epilogue)
# Single-K-step path has no f32 scratch accumulator (saves a (tm,tn) f32 VMEM
# write+read+cast per tile); multi-K path keeps the resident accumulator.
# ----------------------------------------------------------------------------

def _linear_single_k_kernel(x_ref, w_ref, b_ref, o_ref, *, activation):
    y = jnp.dot(x_ref[...], w_ref[...], preferred_element_type=jnp.float32) + b_ref[...]
    o_ref[...] = _apply_activation(y, activation).astype(o_ref.dtype)


def _linear_multi_k_kernel(x_ref, w_ref, b_ref, o_ref, acc_ref, *, activation):
    k = pl.program_id(2)

    @pl.when(k == 0)
    def _():
        acc_ref[...] = jnp.zeros_like(acc_ref)

    acc_ref[...] += jnp.dot(x_ref[...], w_ref[...],
                            preferred_element_type=jnp.float32)

    @pl.when(k == pl.num_programs(2) - 1)
    def _():
        y = acc_ref[...] + b_ref[...]
        o_ref[...] = _apply_activation(y, activation).astype(o_ref.dtype)


def linear(x, w, b, activation="none", out_dtype=jnp.bfloat16,
           tm_cap=512, tn_cap=1024, tk_cap=768):
    M, K = x.shape
    N = w.shape[1]
    tm = _pick_tile(M, tm_cap, 16)
    tn = _pick_tile(N, tn_cap, 128)
    tk = _pick_tile(K, tk_cap, 128)
    kt = K // tk
    b2 = b.reshape(1, N).astype(jnp.float32)

    cost = pl.CostEstimate(
        flops=2 * M * N * K,
        transcendentals=M * N if activation in ("gelu", "tanh") else 0,
        bytes_accessed=(M * K * jnp.dtype(x.dtype).itemsize
                        + K * N * jnp.dtype(w.dtype).itemsize
                        + M * N * jnp.dtype(out_dtype).itemsize + N * 4),
    )

    if kt == 1:
        return pl.pallas_call(
            functools.partial(_linear_single_k_kernel, activation=activation),
            out_shape=jax.ShapeDtypeStruct((M, N), out_dtype),
            grid_spec=pltpu.PrefetchScalarGridSpec(
                num_scalar_prefetch=0,
                grid=(M // tm, N // tn),
                in_specs=[
                    pl.BlockSpec((tm, K), lambda i, j: (i, 0)),
                    pl.BlockSpec((K, tn), lambda i, j: (0, j)),
                    pl.BlockSpec((1, tn), lambda i, j: (0, j)),
                ],
                out_specs=pl.BlockSpec((tm, tn), lambda i, j: (i, j)),
            ),
            compiler_params=pltpu.CompilerParams(
                dimension_semantics=("parallel", "parallel"),
                vmem_limit_bytes=_VMEM_LIMIT,
            ),
            cost_estimate=cost,
        )(x, w, b2)

    return pl.pallas_call(
        functools.partial(_linear_multi_k_kernel, activation=activation),
        out_shape=jax.ShapeDtypeStruct((M, N), out_dtype),
        grid_spec=pltpu.PrefetchScalarGridSpec(
            num_scalar_prefetch=0,
            grid=(M // tm, N // tn, kt),
            in_specs=[
                pl.BlockSpec((tm, tk), lambda i, j, k: (i, k)),
                pl.BlockSpec((tk, tn), lambda i, j, k: (k, j)),
                pl.BlockSpec((1, tn), lambda i, j, k: (0, j)),
            ],
            out_specs=pl.BlockSpec((tm, tn), lambda i, j, k: (i, j)),
            scratch_shapes=[pltpu.VMEM((tm, tn), jnp.float32)],
        ),
        compiler_params=pltpu.CompilerParams(
            dimension_semantics=("parallel", "parallel", "arbitrary"),
            vmem_limit_bytes=_VMEM_LIMIT,
        ),
        cost_estimate=cost,
    )(x, w, b2)


# ----------------------------------------------------------------------------
# Tiled linear with fused residual + LayerNorm epilogue:
#   o = LayerNorm(residual + x @ w + b)      (N kept whole so LN sees the full row)
# ----------------------------------------------------------------------------

def _linear_res_ln_single_kernel(x_ref, w_ref, b_ref, res_ref, g_ref, bt_ref,
                                 o_ref, *, eps):
    h = jnp.dot(x_ref[...], w_ref[...], preferred_element_type=jnp.float32)
    h = h + b_ref[...] + res_ref[...].astype(jnp.float32)
    mu = jnp.mean(h, axis=-1, keepdims=True)
    var = jnp.mean(jnp.square(h - mu), axis=-1, keepdims=True)
    norm = (h - mu) * jax.lax.rsqrt(var + eps)
    o_ref[...] = (norm * g_ref[...] + bt_ref[...]).astype(o_ref.dtype)


def _linear_res_ln_multi_kernel(x_ref, w_ref, b_ref, res_ref, g_ref, bt_ref,
                                o_ref, acc_ref, *, eps):
    k = pl.program_id(1)

    @pl.when(k == 0)
    def _():
        acc_ref[...] = jnp.zeros_like(acc_ref)

    acc_ref[...] += jnp.dot(x_ref[...], w_ref[...],
                            preferred_element_type=jnp.float32)

    @pl.when(k == pl.num_programs(1) - 1)
    def _():
        h = acc_ref[...] + b_ref[...] + res_ref[...].astype(jnp.float32)
        mu = jnp.mean(h, axis=-1, keepdims=True)
        var = jnp.mean(jnp.square(h - mu), axis=-1, keepdims=True)
        norm = (h - mu) * jax.lax.rsqrt(var + eps)
        o_ref[...] = (norm * g_ref[...] + bt_ref[...]).astype(o_ref.dtype)


def linear_residual_layernorm(x, w, b, residual, gamma, beta, eps=1e-12,
                              out_dtype=jnp.bfloat16, tm_cap=512, tk_cap=768):
    M, K = x.shape
    N = w.shape[1]
    tm = _pick_tile(M, tm_cap, 16)
    tk = _pick_tile(K, tk_cap, 128)
    kt = K // tk
    args = (x, w, b.reshape(1, N).astype(jnp.float32), residual,
            gamma.reshape(1, N).astype(jnp.float32),
            beta.reshape(1, N).astype(jnp.float32))

    cost = pl.CostEstimate(
        flops=2 * M * N * K + 8 * M * N,
        transcendentals=M,
        bytes_accessed=(M * K + K * N + 2 * M * N) * 2 + 3 * N * 4,
    )

    if kt == 1:
        return pl.pallas_call(
            functools.partial(_linear_res_ln_single_kernel, eps=eps),
            out_shape=jax.ShapeDtypeStruct((M, N), out_dtype),
            grid_spec=pltpu.PrefetchScalarGridSpec(
                num_scalar_prefetch=0,
                grid=(M // tm,),
                in_specs=[
                    pl.BlockSpec((tm, K), lambda i: (i, 0)),
                    pl.BlockSpec((K, N), lambda i: (0, 0)),
                    pl.BlockSpec((1, N), lambda i: (0, 0)),
                    pl.BlockSpec((tm, N), lambda i: (i, 0)),
                    pl.BlockSpec((1, N), lambda i: (0, 0)),
                    pl.BlockSpec((1, N), lambda i: (0, 0)),
                ],
                out_specs=pl.BlockSpec((tm, N), lambda i: (i, 0)),
            ),
            compiler_params=pltpu.CompilerParams(
                dimension_semantics=("parallel",),
                vmem_limit_bytes=_VMEM_LIMIT,
            ),
            cost_estimate=cost,
        )(*args)

    return pl.pallas_call(
        functools.partial(_linear_res_ln_multi_kernel, eps=eps),
        out_shape=jax.ShapeDtypeStruct((M, N), out_dtype),
        grid_spec=pltpu.PrefetchScalarGridSpec(
            num_scalar_prefetch=0,
            grid=(M // tm, kt),
            in_specs=[
                pl.BlockSpec((tm, tk), lambda i, k: (i, k)),
                pl.BlockSpec((tk, N), lambda i, k: (k, 0)),
                pl.BlockSpec((1, N), lambda i, k: (0, 0)),
                pl.BlockSpec((tm, N), lambda i, k: (i, 0)),
                pl.BlockSpec((1, N), lambda i, k: (0, 0)),
                pl.BlockSpec((1, N), lambda i, k: (0, 0)),
            ],
            out_specs=pl.BlockSpec((tm, N), lambda i, k: (i, 0)),
            scratch_shapes=[pltpu.VMEM((tm, N), jnp.float32)],
        ),
        compiler_params=pltpu.CompilerParams(
            dimension_semantics=("parallel", "arbitrary"),
            vmem_limit_bytes=_VMEM_LIMIT,
        ),
        cost_estimate=cost,
    )(*args)


# ----------------------------------------------------------------------------
# Plain LayerNorm (embedding LN), tiled over rows.
# ----------------------------------------------------------------------------

def _layernorm_kernel(x_ref, g_ref, b_ref, o_ref, *, eps):
    h = x_ref[...].astype(jnp.float32)
    mu = jnp.mean(h, axis=-1, keepdims=True)
    var = jnp.mean(jnp.square(h - mu), axis=-1, keepdims=True)
    norm = (h - mu) * jax.lax.rsqrt(var + eps)
    o_ref[...] = (norm * g_ref[...] + b_ref[...]).astype(o_ref.dtype)


def layernorm(x, gamma, beta, eps=1e-12, out_dtype=jnp.bfloat16, tm_cap=512):
    M, N = x.shape
    tm = _pick_tile(M, tm_cap, 8)
    return pl.pallas_call(
        functools.partial(_layernorm_kernel, eps=eps),
        out_shape=jax.ShapeDtypeStruct((M, N), out_dtype),
        grid_spec=pltpu.PrefetchScalarGridSpec(
            num_scalar_prefetch=0,
            grid=(M // tm,),
            in_specs=[
                pl.BlockSpec((tm, N), lambda i: (i, 0)),
                pl.BlockSpec((1, N), lambda i: (0, 0)),
                pl.BlockSpec((1, N), lambda i: (0, 0)),
            ],
            out_specs=pl.BlockSpec((tm, N), lambda i: (i, 0)),
        ),
        compiler_params=pltpu.CompilerParams(
            dimension_semantics=("parallel",),
            vmem_limit_bytes=_VMEM_LIMIT,
        ),
    )(x, gamma.reshape(1, N).astype(jnp.float32),
      beta.reshape(1, N).astype(jnp.float32))


# ----------------------------------------------------------------------------
# Multi-head attention reading the fused [B*S, 3H] qkv tensor directly via
# BlockSpecs (no head split/merge transposes).  G heads are packed per grid step
# (G*head_dim lanes, >=128 so stores are unmasked); K/V are full-S per step so
# the softmax is a single pass (no online rescale, no K/V re-streaming per q-tile).
# The 1/sqrt(head_dim) scale is folded into the Q projection weights.
# ----------------------------------------------------------------------------

def _mha_kernel(q_ref, k_ref, v_ref, bias_ref, o_ref, *, group, head_dim):
    bias = bias_ref[0]                                   # [1, S] additive mask (0/-1e9)
    ctxs = []
    for g in range(group):                               # static unroll over packed heads
        lo = g * head_dim
        hi = lo + head_dim
        q = q_ref[:, lo:hi]                              # [tq, dh] (already pre-scaled)
        k = k_ref[:, lo:hi]                              # [S,  dh]
        v = v_ref[:, lo:hi]                              # [S,  dh]
        s = jnp.einsum("qd,kd->qk", q, k,
                       preferred_element_type=jnp.float32) + bias      # [tq, S] f32
        s = s - jnp.max(s, axis=-1, keepdims=True)
        p = jnp.exp(s)
        p = p * pl.reciprocal(jnp.sum(p, axis=-1, keepdims=True), approx=True)
        ctxs.append(jnp.dot(p.astype(v.dtype), v,
                            preferred_element_type=jnp.float32))       # [tq, dh] f32
    out = ctxs[0] if group == 1 else jnp.concatenate(ctxs, axis=-1)    # [tq, G*dh]
    o_ref[...] = out.astype(o_ref.dtype)                 # single lane-dense store


def _pick_head_group(num_heads, head_dim, lane_cap):
    """Largest head-group G dividing num_heads with G*head_dim a multiple of 128
    (lane-dense blocks) and <= lane_cap lanes. Falls back to 1 (masked stores)."""
    best = 1
    for g in range(1, num_heads + 1):
        if num_heads % g:
            continue
        width = g * head_dim
        if width % 128 == 0 and width <= max(lane_cap, 128):
            best = g
    return best


def mha_attention(qkv, mask_bias, *, batch, seq, num_heads, head_dim,
                  tq_cap=256, lane_cap=256):
    """qkv: [B*S, 3H] bf16 (q|k|v sections, per-head dh-wide columns);
    mask_bias: [B, 1, S] f32 additive (0 keep / -1e9 pad). Returns [B*S, H]."""
    BS, three_h = qkv.shape
    H = num_heads * head_dim
    assert BS == batch * seq and three_h == 3 * H
    G = _pick_head_group(num_heads, head_dim, lane_cap)
    gw = G * head_dim                     # block lane width
    nhg = num_heads // G                  # head-group count
    tq = _pick_tile(seq, tq_cap, 16)
    qt = seq // tq
    # TODO(synk): K/V are held full-S per step (fine for BERT's S<=512); much longer
    # sequences would need a kv grid axis + online softmax again.

    cost = pl.CostEstimate(
        flops=4 * batch * num_heads * seq * seq * head_dim,
        transcendentals=batch * num_heads * seq * seq,
        bytes_accessed=4 * BS * H * jnp.dtype(qkv.dtype).itemsize + batch * seq * 4,
    )
    return pl.pallas_call(
        functools.partial(_mha_kernel, group=G, head_dim=head_dim),
        out_shape=jax.ShapeDtypeStruct((BS, H), qkv.dtype),
        grid_spec=pltpu.PrefetchScalarGridSpec(
            num_scalar_prefetch=0,
            # q-tile innermost: K/V (and mask) stay VMEM-resident per (batch, head-group)
            grid=(batch, nhg, qt),
            in_specs=[
                pl.BlockSpec((tq, gw), lambda b, hg, qi: (b * qt + qi, hg)),
                pl.BlockSpec((seq, gw), lambda b, hg, qi: (b, nhg + hg)),
                pl.BlockSpec((seq, gw), lambda b, hg, qi: (b, 2 * nhg + hg)),
                pl.BlockSpec((1, 1, seq), lambda b, hg, qi: (b, 0, 0)),
            ],
            out_specs=pl.BlockSpec((tq, gw), lambda b, hg, qi: (b * qt + qi, hg)),
        ),
        compiler_params=pltpu.CompilerParams(
            dimension_semantics=("parallel", "parallel", "parallel"),
            vmem_limit_bytes=_VMEM_LIMIT,
        ),
        cost_estimate=cost,
    )(qkv, qkv, qkv, mask_bias)


# ----------------------------------------------------------------------------
# Fused pooler + projection head: tanh(Linear) -> Linear -> ReLU -> Linear.
# M = batch is tiny, so one un-gridded kernel avoids 3x launch/pipeline-fill cost.
# ----------------------------------------------------------------------------

def _pooler_projection_kernel(cls_ref, pw_ref, pb_ref, w1_ref, b1_ref,
                              w2_ref, b2_ref, pooled_ref, proj_ref):
    pooled = jnp.tanh(
        jnp.dot(cls_ref[...], pw_ref[...], preferred_element_type=jnp.float32)
        + pb_ref[...])
    pooled_ref[...] = pooled.astype(pooled_ref.dtype)
    h = jnp.dot(pooled.astype(w1_ref.dtype), w1_ref[...],
                preferred_element_type=jnp.float32) + b1_ref[...]
    h = jnp.maximum(h, 0.0)
    proj = jnp.dot(h.astype(w2_ref.dtype), w2_ref[...],
                   preferred_element_type=jnp.float32) + b2_ref[...]
    proj_ref[...] = proj.astype(proj_ref.dtype)


def pooler_projection(cls, pool_w, pool_b, w1, b1, w2, b2):
    B, H = cls.shape
    P = w2.shape[1]
    return pl.pallas_call(
        _pooler_projection_kernel,
        out_shape=(jax.ShapeDtypeStruct((B, H), jnp.float32),
                   jax.ShapeDtypeStruct((B, P), jnp.float32)),
        in_specs=[VMEM_SPEC] * 7,
        out_specs=(VMEM_SPEC, VMEM_SPEC),
        compiler_params=pltpu.CompilerParams(vmem_limit_bytes=_VMEM_LIMIT),
    )(cls, pool_w, pool_b.reshape(1, H).astype(jnp.float32),
      w1, b1.reshape(1, H).astype(jnp.float32),
      w2, b2.reshape(1, P).astype(jnp.float32))


# ----------------------------------------------------------------------------
# Model (glue in plain JAX, hot paths in the kernels above)
# ----------------------------------------------------------------------------

CFG = dict(
    vocab_size=128,
    type_vocab_size=2,
    max_position=16,
    hidden=128,          # stands in for embedding_dim=768 (kept a 128-lane multiple)
    heads=2,
    head_dim=64,
    intermediate=256,    # stands in for 3072
    num_layers=2,
    projection_dim=128,  # stands in for projection_dim=512
)


def init_params(key, cfg):
    wdt = jnp.bfloat16   # MXU operand storage; accumulation stays f32 inside kernels

    def nrm(k, shape):
        return jax.random.normal(k, shape, jnp.float32) * 0.02

    keys = iter(jax.random.split(key, 512))
    H, I = cfg["hidden"], cfg["intermediate"]
    dh = cfg["head_dim"]
    p = {
        "word_emb": nrm(next(keys), (cfg["vocab_size"], H)),
        "pos_emb": nrm(next(keys), (cfg["max_position"], H)),
        "type_emb": nrm(next(keys), (cfg["type_vocab_size"], H)),
        "emb_ln_g": jnp.ones((H,), jnp.float32),
        "emb_ln_b": jnp.zeros((H,), jnp.float32),
        "layers": [],
        "pool_w": nrm(next(keys), (H, H)).astype(wdt),
        "pool_b": jnp.zeros((H,), jnp.float32),
        # projection head: Linear(H,H) -> ReLU -> Linear(H, projection_dim)
        "proj1_w": nrm(next(keys), (H, H)).astype(wdt),
        "proj1_b": jnp.zeros((H,), jnp.float32),
        "proj2_w": nrm(next(keys), (H, cfg["projection_dim"])).astype(wdt),
        "proj2_b": jnp.zeros((cfg["projection_dim"],), jnp.float32),
    }
    scale = 1.0 / math.sqrt(dh)
    for _ in range(cfg["num_layers"]):
        q_w = nrm(next(keys), (H, H))
        k_w = nrm(next(keys), (H, H))
        v_w = nrm(next(keys), (H, H))
        q_b = jnp.zeros((H,), jnp.float32)
        k_b = jnp.zeros((H,), jnp.float32)
        v_b = jnp.zeros((H,), jnp.float32)
        # Fold the 1/sqrt(head_dim) attention scale into the Q projection, and fuse
        # Q/K/V into a single [H, 3H] matmul weight (per-head dh-wide column blocks).
        layer = {
            "qkv_w": jnp.concatenate([q_w * scale, k_w, v_w], axis=1).astype(wdt),
            "qkv_b": jnp.concatenate([q_b * scale, k_b, v_b], axis=0),
            "o_w": nrm(next(keys), (H, H)).astype(wdt),
            "o_b": jnp.zeros((H,), jnp.float32),
            "ln1_g": jnp.ones((H,), jnp.float32), "ln1_b": jnp.zeros((H,), jnp.float32),
            "ff1_w": nrm(next(keys), (H, I)).astype(wdt),
            "ff1_b": jnp.zeros((I,), jnp.float32),
            "ff2_w": nrm(next(keys), (I, H)).astype(wdt),
            "ff2_b": jnp.zeros((H,), jnp.float32),
            "ln2_g": jnp.ones((H,), jnp.float32), "ln2_b": jnp.zeros((H,), jnp.float32),
        }
        p["layers"].append(layer)
    return p


def encoder_layer(x, mask_bias, p, cfg):
    """x: [B, S, H] bf16; mask_bias: [B, 1, S] f32 additive (0 / -1e9)."""
    B, S, H = x.shape
    nh, dh = cfg["heads"], cfg["head_dim"]
    x2 = x.reshape(B * S, H)

    # Fused QKV projection; attention reads q/k/v windows straight out of this tensor.
    qkv = linear(x2, p["qkv_w"], p["qkv_b"])                       # [B*S, 3H] bf16
    ctx = mha_attention(qkv, mask_bias, batch=B, seq=S,
                        num_heads=nh, head_dim=dh)                 # [B*S, H] bf16

    # o-proj with fused residual + LayerNorm epilogue.
    h1 = linear_residual_layernorm(ctx, p["o_w"], p["o_b"], x2,
                                   p["ln1_g"], p["ln1_b"])
    # FFN: GELU fused into fc1 epilogue, residual + LayerNorm fused into fc2 epilogue.
    ff = linear(h1, p["ff1_w"], p["ff1_b"], activation="gelu")
    h2 = linear_residual_layernorm(ff, p["ff2_w"], p["ff2_b"], h1,
                                   p["ln2_g"], p["ln2_b"])
    return h2.reshape(B, S, H)


def bert_embedding_model(input_ids, attention_mask, params, cfg):
    """Returns (pooled, projection), mirroring BERTEmbeddingModel.forward."""
    B, S = input_ids.shape
    H = cfg["hidden"]

    # Embedding gathers (plain-JAX glue).
    word = params["word_emb"][input_ids]                              # [B,S,H]
    pos = params["pos_emb"][jnp.arange(S)][None, :, :]                # [1,S,H]
    tok = params["type_emb"][jnp.zeros((B, S), jnp.int32)]            # [B,S,H]
    emb = (word + pos + tok).reshape(B * S, H)
    x = layernorm(emb, params["emb_ln_g"], params["emb_ln_b"]).reshape(B, S, H)

    # Additive attention bias: 0 for real tokens, -1e9 for padding (one in-kernel add
    # replaces compare + two selects).
    mask_bias = ((1.0 - attention_mask.astype(jnp.float32)) * -1e9).reshape(B, 1, S)

    for layer_params in params["layers"]:
        x = encoder_layer(x, mask_bias, layer_params, cfg)

    # Pooler (tanh(Linear(h[:,0]))) + projection head in one fused kernel.
    cls = x[:, 0, :]                                                  # [B,H]
    pooled, projection = pooler_projection(
        cls, params["pool_w"], params["pool_b"],
        params["proj1_w"], params["proj1_b"],
        params["proj2_w"], params["proj2_b"])
    return pooled, projection


# ----------------------------------------------------------------------------

if __name__ == "__main__":
    key = jax.random.PRNGKey(0)
    k_params, k_ids = jax.random.split(key)

    params = init_params(k_params, CFG)

    B, S = 2, 8
    input_ids = jax.random.randint(k_ids, (B, S), 0, CFG["vocab_size"], jnp.int32)
    attention_mask = jnp.array(
        [[1, 1, 1, 1, 1, 1, 1, 1],
         [1, 1, 1, 1, 1, 0, 0, 0]], dtype=jnp.int32)

    fwd = jax.jit(functools.partial(bert_embedding_model, params=params, cfg=CFG))
    pooled, projection = fwd(input_ids, attention_mask)
    jax.block_until_ready((pooled, projection))

    assert pooled.shape == (B, CFG["hidden"])
    assert projection.shape == (B, CFG["projection_dim"])
    assert bool(jnp.isfinite(pooled).all()) and bool(jnp.isfinite(projection).all())
    print("KERNEL_OK")
</pallas_src>

<mosaic_0001>
module attributes {stable_mosaic.version = 11 : i64} {
  func.func @_layernorm_kernel(%arg0: i32, %arg1: memref<16x128xf32, #tpu.memory_space<vmem>>, %arg2: memref<1x128xf32, #tpu.memory_space<vmem>>, %arg3: memref<1x128xf32, #tpu.memory_space<vmem>>, %arg4: memref<16x128xbf16, #tpu.memory_space<vmem>>) attributes {dimension_semantics = [#tpu.dimension_semantics<parallel>], iteration_bounds = array<i64: 1>, scalar_prefetch = 0 : i64, scratch_operands = 0 : i64, tpu.core_type = #tpu.core_type<tc>, window_params = [{transform_indices = @transform_0, window_bounds = array<i64: 16, 128>}, {pipeline_mode = #tpu.pipeline_mode<synchronous>, transform_indices = @transform_1, window_bounds = array<i64: 1, 128>}, {pipeline_mode = #tpu.pipeline_mode<synchronous>, transform_indices = @transform_2, window_bounds = array<i64: 1, 128>}, {transform_indices = @transform_3, window_bounds = array<i64: 16, 128>}]} {
    %c0 = arith.constant 0 : index
    %c0_0 = arith.constant 0 : index
    %0 = vector.load %arg1[%c0, %c0_0] : memref<16x128xf32, #tpu.memory_space<vmem>>, vector<16x128xf32>
    %cst = arith.constant dense<0.000000e+00> : vector<16xf32>
    %1 = vector.multi_reduction <add>, %0, %cst [1] : vector<16x128xf32> to vector<16xf32>
    %2 = vector.shape_cast %1 : vector<16xf32> to vector<16x1xf32>
    %cst_1 = arith.constant 1.280000e+02 : f32
    %3 = vector.broadcast %cst_1 : f32 to vector<16x1xf32>
    %4 = arith.divf %2, %3 : vector<16x1xf32>
    %5 = vector.broadcast %4 : vector<16x1xf32> to vector<16x128xf32>
    %6 = arith.subf %0, %5 : vector<16x128xf32>
    %7 = arith.mulf %6, %6 : vector<16x128xf32>
    %cst_2 = arith.constant dense<0.000000e+00> : vector<16xf32>
    %8 = vector.multi_reduction <add>, %7, %cst_2 [1] : vector<16x128xf32> to vector<16xf32>
    %9 = vector.shape_cast %8 : vector<16xf32> to vector<16x1xf32>
    %cst_3 = arith.constant 1.280000e+02 : f32
    %10 = vector.broadcast %cst_3 : f32 to vector<16x1xf32>
    %11 = arith.divf %9, %10 : vector<16x1xf32>
    %12 = vector.broadcast %4 : vector<16x1xf32> to vector<16x128xf32>
    %13 = arith.subf %0, %12 : vector<16x128xf32>
    %cst_4 = arith.constant 9.99999996E-13 : f32
    %14 = vector.broadcast %cst_4 : f32 to vector<16x1xf32>
    %15 = arith.addf %11, %14 : vector<16x1xf32>
    %16 = math.rsqrt %15 : vector<16x1xf32>
    %17 = vector.broadcast %16 : vector<16x1xf32> to vector<16x128xf32>
    %18 = arith.mulf %13, %17 : vector<16x128xf32>
    %c0_5 = arith.constant 0 : index
    %c0_6 = arith.constant 0 : index
    %19 = vector.load %arg2[%c0_5, %c0_6] : memref<1x128xf32, #tpu.memory_space<vmem>>, vector<1x128xf32>
    %20 = vector.broadcast %19 : vector<1x128xf32> to vector<16x128xf32>
    %21 = arith.mulf %18, %20 : vector<16x128xf32>
    %c0_7 = arith.constant 0 : index
    %c0_8 = arith.constant 0 : index
    %22 = vector.load %arg3[%c0_7, %c0_8] : memref<1x128xf32, #tpu.memory_space<vmem>>, vector<1x128xf32>
    %23 = vector.broadcast %22 : vector<1x128xf32> to vector<16x128xf32>
    %24 = arith.addf %21, %23 : vector<16x128xf32>
    %25 = arith.truncf %24 : vector<16x128xf32> to vector<16x128xbf16>
    %c0_9 = arith.constant 0 : index
    %c0_10 = arith.constant 0 : index
    %26 = vector.load %arg4[%c0_9, %c0_10] : memref<16x128xbf16, #tpu.memory_space<vmem>>, vector<16x128xbf16>
    tpu.vector_store %arg4[%c0_9, %c0_10], %25 {strides = array<i32>} : memref<16x128xbf16, #tpu.memory_space<vmem>>, vector<16x128xbf16>,
    return
  }
  func.func @transform_0(%arg0: i32) -> (i32, i32) {
    %c0_i32 = arith.constant 0 : i32
    %c0_i32_0 = arith.constant 0 : i32
    return %arg0, %c0_i32 : i32, i32
  }
  func.func @transform_1(%arg0: i32) -> (i32, i32) {
    %c0_i32 = arith.constant 0 : i32
    %c0_i32_0 = arith.constant 0 : i32
    %c0_i32_1 = arith.constant 0 : i32
    return %c0_i32, %c0_i32_0 : i32, i32
  }
  func.func @transform_2(%arg0: i32) -> (i32, i32) {
    %c0_i32 = arith.constant 0 : i32
    %c0_i32_0 = arith.constant 0 : i32
    %c0_i32_1 = arith.constant 0 : i32
    return %c0_i32, %c0_i32_0 : i32, i32
  }
  func.func @transform_3(%arg0: i32) -> (i32, i32) {
    %c0_i32 = arith.constant 0 : i32
    %c0_i32_0 = arith.constant 0 : i32
    return %arg0, %c0_i32 : i32, i32
  }
}

module attributes {stable_mosaic.version = 11 : i64} {
  func.func @_linear_single_k_kernel(%arg0: i32, %arg1: i32, %arg2: memref<16x128xbf16, #tpu.memory_space<vmem>>, %arg3: memref<128x384xbf16, #tpu.memory_space<vmem>>, %arg4: memref<1x384xf32, #tpu.memory_space<vmem>>, %arg5: memref<16x384xbf16, #tpu.memory_space<vmem>>) attributes {dimension_semantics = [#tpu.dimension_semantics<parallel>, #tpu.dimension_semantics<parallel>], iteration_bounds = array<i64: 1, 1>, scalar_prefetch = 0 : i64, scratch_operands = 0 : i64, tpu.core_type = #tpu.core_type<tc>, window_params = [{transform_indices = @transform_0, window_bounds = array<i64: 16, 128>}, {transform_indices = @transform_1, window_bounds = array<i64: 128, 384>}, {transform_indices = @transform_2, window_bounds = array<i64: 1, 384>}, {transform_indices = @transform_3, window_bounds = array<i64: 16, 384>}]} {
    %c0 = arith.constant 0 : index
    %c0_0 = arith.constant 0 : index
    %0 = vector.load %arg2[%c0, %c0_0] : memref<16x128xbf16, #tpu.memory_space<vmem>>, vector<16x128xbf16>
    %c0_1 = arith.constant 0 : index
    %c0_2 = arith.constant 0 : index
    %1 = vector.load %arg3[%c0_1, %c0_2] : memref<128x384xbf16, #tpu.memory_space<vmem>>, vector<128x384xbf16>
    %cst = arith.constant dense<0.000000e+00> : vector<16x384xf32>
    %2 = tpu.matmul %0, %1, %cst {dimension_numbers = #tpu.dot_dimension_numbers<[1], [0], [0], [1], [0, 0, 1, 1], [], []>} : vector<16x128xbf16>, vector<128x384xbf16>, vector<16x384xf32> -> vector<16x384xf32>
    %c0_3 = arith.constant 0 : index
    %c0_4 = arith.constant 0 : index
    %3 = vector.load %arg4[%c0_3, %c0_4] : memref<1x384xf32, #tpu.memory_space<vmem>>, vector<1x384xf32>
    %4 = vector.broadcast %3 : vector<1x384xf32> to vector<16x384xf32>
    %5 = arith.addf %2, %4 : vector<16x384xf32>
    %6 = arith.truncf %5 : vector<16x384xf32> to vector<16x384xbf16>
    %c0_5 = arith.constant 0 : index
    %c0_6 = arith.constant 0 : index
    %7 = vector.load %arg5[%c0_5, %c0_6] : memref<16x384xbf16, #tpu.memory_space<vmem>>, vector<16x384xbf16>
    tpu.vector_store %arg5[%c0_5, %c0_6], %6 {strides = array<i32>} : memref<16x384xbf16, #tpu.memory_space<vmem>>, vector<16x384xbf16>,
    return
  }
  func.func @transform_0(%arg0: i32, %arg1: i32) -> (i32, i32) {
    %c0_i32 = arith.constant 0 : i32
    %c0_i32_0 = arith.constant 0 : i32
    return %arg0, %c0_i32 : i32, i32
  }
  func.func @transform_1(%arg0: i32, %arg1: i32) -> (i32, i32) {
    %c0_i32 = arith.constant 0 : i32
    %c0_i32_0 = arith.constant 0 : i32
    return %c0_i32, %arg1 : i32, i32
  }
  func.func @transform_2(%arg0: i32, %arg1: i32) -> (i32, i32) {
    %c0_i32 = arith.constant 0 : i32
    %c0_i32_0 = arith.constant 0 : i32
    return %c0_i32, %arg1 : i32, i32
  }
  func.func @transform_3(%arg0: i32, %arg1: i32) -> (i32, i32) {
    %c0_i32 = arith.constant 0 : i32
    return %arg0, %arg1 : i32, i32
  }
}

module attributes {stable_mosaic.version = 11 : i64} {
  func.func @_mha_kernel(%arg0: i32, %arg1: i32, %arg2: i32, %arg3: memref<8x128xbf16, #tpu.memory_space<vmem>>, %arg4: memref<8x128xbf16, #tpu.memory_space<vmem>>, %arg5: memref<8x128xbf16, #tpu.memory_space<vmem>>, %arg6: memref<1x1x8xf32, #tpu.memory_space<vmem>>, %arg7: memref<8x128xbf16, #tpu.memory_space<vmem>>) attributes {dimension_semantics = [#tpu.dimension_semantics<parallel>, #tpu.dimension_semantics<parallel>, #tpu.dimension_semantics<parallel>], iteration_bounds = array<i64: 2, 1, 1>, scalar_prefetch = 0 : i64, scratch_operands = 0 : i64, tpu.core_type = #tpu.core_type<tc>, window_params = [{transform_indices = @transform_0, window_bounds = array<i64: 8, 128>}, {transform_indices = @transform_1, window_bounds = array<i64: 8, 128>}, {transform_indices = @transform_2, window_bounds = array<i64: 8, 128>}, {transform_indices = @transform_3, window_bounds = array<i64: 1, 1, 8>}, {transform_indices = @transform_4, window_bounds = array<i64: 8, 128>}]} {
    %c0 = arith.constant 0 : index
    %c0_0 = arith.constant 0 : index
    %c0_1 = arith.constant 0 : index
    %0 = vector.load %arg6[%c0, %c0_0, %c0_1] : memref<1x1x8xf32, #tpu.memory_space<vmem>>, vector<1x1x8xf32>
    %1 = vector.shape_cast %0 : vector<1x1x8xf32> to vector<1x8xf32>
    %c0_2 = arith.constant 0 : index
    %c0_3 = arith.constant 0 : index
    %2 = vector.load %arg3[%c0_2, %c0_3] : memref<8x128xbf16, #tpu.memory_space<vmem>>, vector<8x64xbf16>
    %c0_4 = arith.constant 0 : index
    %c0_5 = arith.constant 0 : index
    %3 = vector.load %arg4[%c0_4, %c0_5] : memref<8x128xbf16, #tpu.memory_space<vmem>>, vector<8x64xbf16>
    %c0_6 = arith.constant 0 : index
    %c0_7 = arith.constant 0 : index
    %4 = vector.load %arg5[%c0_6, %c0_7] : memref<8x128xbf16, #tpu.memory_space<vmem>>, vector<8x64xbf16>
    "tpu.trace_start"() <{level = 10 : i32, message = "qd,kd->qk"}> : () -> ()
    %cst = arith.constant dense<0.000000e+00> : vector<8x8xf32>
    %5 = tpu.matmul %2, %3, %cst {dimension_numbers = #tpu.dot_dimension_numbers<[1], [1], [0], [0], [0, 0, 1, 0], [], []>} : vector<8x64xbf16>, vector<8x64xbf16>, vector<8x8xf32> -> vector<8x8xf32>
    "tpu.trace_stop"() : () -> ()
    %6 = vector.broadcast %1 : vector<1x8xf32> to vector<8x8xf32>
    %7 = arith.addf %5, %6 : vector<8x8xf32>
    %cst_8 = arith.constant dense<0xFF800000> : vector<8xf32>
    %8 = vector.multi_reduction <maximumf>, %7, %cst_8 [1] : vector<8x8xf32> to vector<8xf32>
    %9 = vector.shape_cast %8 : vector<8xf32> to vector<8x1xf32>
    %10 = vector.broadcast %9 : vector<8x1xf32> to vector<8x8xf32>
    %11 = arith.subf %7, %10 : vector<8x8xf32>
    %12 = math.exp %11 : vector<8x8xf32>
    %cst_9 = arith.constant dense<0.000000e+00> : vector<8xf32>
    %13 = vector.multi_reduction <add>, %12, %cst_9 [1] : vector<8x8xf32> to vector<8xf32>
    %14 = vector.shape_cast %13 : vector<8xf32> to vector<8x1xf32>
    %15 = tpu.reciprocal %14 {approx = true} : vector<8x1xf32> -> vector<8x1xf32>
    %16 = vector.broadcast %15 : vector<8x1xf32> to vector<8x8xf32>
    %17 = arith.mulf %12, %16 : vector<8x8xf32>
    %18 = arith.truncf %17 : vector<8x8xf32> to vector<8x8xbf16>
    %cst_10 = arith.constant dense<0.000000e+00> : vector<8x64xf32>
    %19 = tpu.matmul %18, %4, %cst_10 {dimension_numbers = #tpu.dot_dimension_numbers<[1], [0], [0], [1], [0, 0, 1, 1], [], []>} : vector<8x8xbf16>, vector<8x64xbf16>, vector<8x64xf32> -> vector<8x64xf32>
    %c0_11 = arith.constant 0 : index
    %c64 = arith.constant 64 : index
    %20 = vector.load %arg3[%c0_11, %c64] : memref<8x128xbf16, #tpu.memory_space<vmem>>, vector<8x64xbf16>
    %c0_12 = arith.constant 0 : index
    %c64_13 = arith.constant 64 : index
    %21 = vector.load %arg4[%c0_12, %c64_13] : memref<8x128xbf16, #tpu.memory_space<vmem>>, vector<8x64xbf16>
    %c0_14 = arith.constant 0 : index
    %c64_15 = arith.constant 64 : index
    %22 = vector.load %arg5[%c0_14, %c64_15] : memref<8x128xbf16, #tpu.memory_space<vmem>>, vector<8x64xbf16>
    "tpu.trace_start"() <{level = 10 : i32, message = "qd,kd->qk"}> : () -> ()
    %cst_16 = arith.constant dense<0.000000e+00> : vector<8x8xf32>
    %23 = tpu.matmul %20, %21, %cst_16 {dimension_numbers = #tpu.dot_dimension_numbers<[1], [1], [0], [0], [0, 0, 1, 0], [], []>} : vector<8x64xbf16>, vector<8x64xbf16>, vector<8x8xf32> -> vector<8x8xf32>
    "tpu.trace_stop"() : () -> ()
    %24 = vector.broadcast %1 : vector<1x8xf32> to vector<8x8xf32>
    %25 = arith.addf %23, %24 : vector<8x8xf32>
    %cst_17 = arith.constant dense<0xFF800000> : vector<8xf32>
    %26 = vector.multi_reduction <maximumf>, %25, %cst_17 [1] : vector<8x8xf32> to vector<8xf32>
    %27 = vector.shape_cast %26 : vector<8xf32> to vector<8x1xf32>
    %28 = vector.broadcast %27 : vector<8x1xf32> to vector<8x8xf32>
    %29 = arith.subf %25, %28 : vector<8x8xf32>
    %30 = math.exp %29 : vector<8x8xf32>
    %cst_18 = arith.constant dense<0.000000e+00> : vector<8xf32>
    %31 = vector.multi_reduction <add>, %30, %cst_18 [1] : vector<8x8xf32> to vector<8xf32>
    %32 = vector.shape_cast %31 : vector<8xf32> to vector<8x1xf32>
    %33 = tpu.reciprocal %32 {approx = true} : vector<8x1xf32> -> vector<8x1xf32>
    %34 = vector.broadcast %33 : vector<8x1xf32> to vector<8x8xf32>
    %35 = arith.mulf %30, %34 : vector<8x8xf32>
    %36 = arith.truncf %35 : vector<8x8xf32> to vector<8x8xbf16>
    %cst_19 = arith.constant dense<0.000000e+00> : vector<8x64xf32>
    %37 = tpu.matmul %36, %22, %cst_19 {dimension_numbers = #tpu.dot_dimension_numbers<[1], [0], [0], [1], [0, 0, 1, 1], [], []>} : vector<8x8xbf16>, vector<8x64xbf16>, vector<8x64xf32> -> vector<8x64xf32>
    %38 = tpu.concatenate %19, %37 in 1 : vector<8x64xf32>, vector<8x64xf32> -> vector<8x128xf32>
    %39 = arith.truncf %38 : vector<8x128xf32> to vector<8x128xbf16>
    %c0_20 = arith.constant 0 : index
    %c0_21 = arith.constant 0 : index
    %40 = vector.load %arg7[%c0_20, %c0_21] : memref<8x128xbf16, #tpu.memory_space<vmem>>, vector<8x128xbf16>
    tpu.vector_store %arg7[%c0_20, %c0_21], %39 {strides = array<i32>} : memref<8x128xbf16, #tpu.memory_space<vmem>>, vector<8x128xbf16>,
    return
  }
  func.func @transform_0(%arg0: i32, %arg1: i32, %arg2: i32) -> (i32, i32) {
    %c1_i32 = arith.constant 1 : i32
    %0 = arith.muli %arg0, %c1_i32 : i32
    %1 = arith.addi %0, %arg2 : i32
    %c0_i32 = arith.constant 0 : i32
    return %1, %arg1 : i32, i32
  }
  func.func @transform_1(%arg0: i32, %arg1: i32, %arg2: i32) -> (i32, i32) {
    %c1_i32 = arith.constant 1 : i32
    %0 = arith.addi %c1_i32, %arg1 : i32
    %c0_i32 = arith.constant 0 : i32
    return %arg0, %0 : i32, i32
  }
  func.func @transform_2(%arg0: i32, %arg1: i32, %arg2: i32) -> (i32, i32) {
    %c2_i32 = arith.constant 2 : i32
    %0 = arith.addi %c2_i32, %arg1 : i32
    %c0_i32 = arith.constant 0 : i32
    return %arg0, %0 : i32, i32
  }
  func.func @transform_3(%arg0: i32, %arg1: i32, %arg2: i32) -> (i32, i32, i32) {
    %c0_i32 = arith.constant 0 : i32
    %c0_i32_0 = arith.constant 0 : i32
    %c0_i32_1 = arith.constant 0 : i32
    return %arg0, %c0_i32, %c0_i32_0 : i32, i32, i32
  }
  func.func @transform_4(%arg0: i32, %arg1: i32, %arg2: i32) -> (i32, i32) {
    %c1_i32 = arith.constant 1 : i32
    %0 = arith.muli %arg0, %c1_i32 : i32
    %1 = arith.addi %0, %arg2 : i32
    %c0_i32 = arith.constant 0 : i32
    return %1, %arg1 : i32, i32
  }
}

module attributes {stable_mosaic.version = 11 : i64} {
  func.func @_linear_res_ln_single_kernel(%arg0: i32, %arg1: memref<16x128xbf16, #tpu.memory_space<vmem>>, %arg2: memref<128x128xbf16, #tpu.memory_space<vmem>>, %arg3: memref<1x128xf32, #tpu.memory_space<vmem>>, %arg4: memref<16x128xbf16, #tpu.memory_space<vmem>>, %arg5: memref<1x128xf32, #tpu.memory_space<vmem>>, %arg6: memref<1x128xf32, #tpu.memory_space<vmem>>, %arg7: memref<16x128xbf16, #tpu.memory_space<vmem>>) attributes {dimension_semantics = [#tpu.dimension_semantics<parallel>], iteration_bounds = array<i64: 1>, scalar_prefetch = 0 : i64, scratch_operands = 0 : i64, tpu.core_type = #tpu.core_type<tc>, window_params = [{transform_indices = @transform_0, window_bounds = array<i64: 16, 128>}, {pipeline_mode = #tpu.pipeline_mode<synchronous>, transform_indices = @transform_1, window_bounds = array<i64: 128, 128>}, {pipeline_mode = #tpu.pipeline_mode<synchronous>, transform_indices = @transform_2, window_bounds = array<i64: 1, 128>}, {transform_indices = @transform_3, window_bounds = array<i64: 16, 128>}, {pipeline_mode = #tpu.pipeline_mode<synchronous>, transform_indices = @transform_4, window_bounds = array<i64: 1, 128>}, {pipeline_mode = #tpu.pipeline_mode<synchronous>, transform_indices = @transform_5, window_bounds = array<i64: 1, 128>}, {transform_indices = @transform_6, window_bounds = array<i64: 16, 128>}]} {
    %c0 = arith.constant 0 : index
    %c0_0 = arith.constant 0 : index
    %0 = vector.load %arg1[%c0, %c0_0] : memref<16x128xbf16, #tpu.memory_space<vmem>>, vector<16x128xbf16>
    %c0_1 = arith.constant 0 : index
    %c0_2 = arith.constant 0 : index
    %1 = vector.load %arg2[%c0_1, %c0_2] : memref<128x128xbf16, #tpu.memory_space<vmem>>, vector<128x128xbf16>
    %cst = arith.constant dense<0.000000e+00> : vector<16x128xf32>
    %2 = tpu.matmul %0, %1, %cst {dimension_numbers = #tpu.dot_dimension_numbers<[1], [0], [0], [1], [0, 0, 1, 1], [], []>} : vector<16x128xbf16>, vector<128x128xbf16>, vector<16x128xf32> -> vector<16x128xf32>
    %c0_3 = arith.constant 0 : index
    %c0_4 = arith.constant 0 : index
    %3 = vector.load %arg3[%c0_3, %c0_4] : memref<1x128xf32, #tpu.memory_space<vmem>>, vector<1x128xf32>
    %4 = vector.broadcast %3 : vector<1x128xf32> to vector<16x128xf32>
    %5 = arith.addf %2, %4 : vector<16x128xf32>
    %c0_5 = arith.constant 0 : index
    %c0_6 = arith.constant 0 : index
    %6 = vector.load %arg4[%c0_5, %c0_6] : memref<16x128xbf16, #tpu.memory_space<vmem>>, vector<16x128xbf16>
    %7 = arith.extf %6 : vector<16x128xbf16> to vector<16x128xf32>
    %8 = arith.addf %5, %7 : vector<16x128xf32>
    %cst_7 = arith.constant dense<0.000000e+00> : vector<16xf32>
    %9 = vector.multi_reduction <add>, %8, %cst_7 [1] : vector<16x128xf32> to vector<16xf32>
    %10 = vector.shape_cast %9 : vector<16xf32> to vector<16x1xf32>
    %cst_8 = arith.constant 1.280000e+02 : f32
    %11 = vector.broadcast %cst_8 : f32 to vector<16x1xf32>
    %12 = arith.divf %10, %11 : vector<16x1xf32>
    %13 = vector.broadcast %12 : vector<16x1xf32> to vector<16x128xf32>
    %14 = arith.subf %8, %13 : vector<16x128xf32>
    %15 = arith.mulf %14, %14 : vector<16x128xf32>
    %cst_9 = arith.constant dense<0.000000e+00> : vector<16xf32>
    %16 = vector.multi_reduction <add>, %15, %cst_9 [1] : vector<16x128xf32> to vector<16xf32>
    %17 = vector.shape_cast %16 : vector<16xf32> to vector<16x1xf32>
    %cst_10 = arith.constant 1.280000e+02 : f32
    %18 = vector.broadcast %cst_10 : f32 to vector<16x1xf32>
    %19 = arith.divf %17, %18 : vector<16x1xf32>
    %20 = vector.broadcast %12 : vector<16x1xf32> to vector<16x128xf32>
    %21 = arith.subf %8, %20 : vector<16x128xf32>
    %cst_11 = arith.constant 9.99999996E-13 : f32
    %22 = vector.broadcast %cst_11 : f32 to vector<16x1xf32>
    %23 = arith.addf %19, %22 : vector<16x1xf32>
    %24 = math.rsqrt %23 : vector<16x1xf32>
    %25 = vector.broadcast %24 : vector<16x1xf32> to vector<16x128xf32>
    %26 = arith.mulf %21, %25 : vector<16x128xf32>
    %c0_12 = arith.constant 0 : index
    %c0_13 = arith.constant 0 : index
    %27 = vector.load %arg5[%c0_12, %c0_13] : memref<1x128xf32, #tpu.memory_space<vmem>>, vector<1x128xf32>
    %28 = vector.broadcast %27 : vector<1x128xf32> to vector<16x128xf32>
    %29 = arith.mulf %26, %28 : vector<16x128xf32>
    %c0_14 = arith.constant 0 : index
    %c0_15 = arith.constant 0 : index
    %30 = vector.load %arg6[%c0_14, %c0_15] : memref<1x128xf32, #tpu.memory_space<vmem>>, vector<1x128xf32>
    %31 = vector.broadcast %30 : vector<1x128xf32> to vector<16x128xf32>
    %32 = arith.addf %29, %31 : vector<16x128xf32>
    %33 = arith.truncf %32 : vector<16x128xf32> to vector<16x128xbf16>
    %c0_16 = arith.constant 0 : index
    %c0_17 = arith.constant 0 : index
    %34 = vector.load %arg7[%c0_16, %c0_17] : memref<16x128xbf16, #tpu.memory_space<vmem>>, vector<16x128xbf16>
    tpu.vector_store %arg7[%c0_16, %c0_17], %33 {strides = array<i32>} : memref<16x128xbf16, #tpu.memory_space<vmem>>, vector<16x128xbf16>,
    return
  }
  func.func @transform_0(%arg0: i32) -> (i32, i32) {
    %c0_i32 = arith.constant 0 : i32
    %c0_i32_0 = arith.constant 0 : i32
    return %arg0, %c0_i32 : i32, i32
  }
  func.func @transform_1(%arg0: i32) -> (i32, i32) {
    %c0_i32 = arith.constant 0 : i32
    %c0_i32_0 = arith.constant 0 : i32
    %c0_i32_1 = arith.constant 0 : i32
    return %c0_i32, %c0_i32_0 : i32, i32
  }
  func.func @transform_2(%arg0: i32) -> (i32, i32) {
    %c0_i32 = arith.constant 0 : i32
    %c0_i32_0 = arith.constant 0 : i32
    %c0_i32_1 = arith.constant 0 : i32
    return %c0_i32, %c0_i32_0 : i32, i32
  }
  func.func @transform_3(%arg0: i32) -> (i32, i32) {
    %c0_i32 = arith.constant 0 : i32
    %c0_i32_0 = arith.constant 0 : i32
    return %arg0, %c0_i32 : i32, i32
  }
  func.func @transform_4(%arg0: i32) -> (i32, i32) {
    %c0_i32 = arith.constant 0 : i32
    %c0_i32_0 = arith.constant 0 : i32
    %c0_i32_1 = arith.constant 0 : i32
    return %c0_i32, %c0_i32_0 : i32, i32
  }
  func.func @transform_5(%arg0: i32) -> (i32, i32) {
    %c0_i32 = arith.constant 0 : i32
    %c0_i32_0 = arith.constant 0 : i32
    %c0_i32_1 = arith.constant 0 : i32
    return %c0_i32, %c0_i32_0 : i32, i32
  }
  func.func @transform_6(%arg0: i32) -> (i32, i32) {
    %c0_i32 = arith.constant 0 : i32
    %c0_i32_0 = arith.constant 0 : i32
    return %arg0, %c0_i32 : i32, i32
  }
}

module attributes {stable_mosaic.version = 11 : i64} {
  func.func @_linear_single_k_kernel(%arg0: i32, %arg1: i32, %arg2: memref<16x128xbf16, #tpu.memory_space<vmem>>, %arg3: memref<128x256xbf16, #tpu.memory_space<vmem>>, %arg4: memref<1x256xf32, #tpu.memory_space<vmem>>, %arg5: memref<16x256xbf16, #tpu.memory_space<vmem>>) attributes {dimension_semantics = [#tpu.dimension_semantics<parallel>, #tpu.dimension_semantics<parallel>], iteration_bounds = array<i64: 1, 1>, scalar_prefetch = 0 : i64, scratch_operands = 0 : i64, tpu.core_type = #tpu.core_type<tc>, window_params = [{transform_indices = @transform_0, window_bounds = array<i64: 16, 128>}, {transform_indices = @transform_1, window_bounds = array<i64: 128, 256>}, {transform_indices = @transform_2, window_bounds = array<i64: 1, 256>}, {transform_indices = @transform_3, window_bounds = array<i64: 16, 256>}]} {
    %c0 = arith.constant 0 : index
    %c0_0 = arith.constant 0 : index
    %0 = vector.load %arg2[%c0, %c0_0] : memref<16x128xbf16, #tpu.memory_space<vmem>>, vector<16x128xbf16>
    %c0_1 = arith.constant 0 : index
    %c0_2 = arith.constant 0 : index
    %1 = vector.load %arg3[%c0_1, %c0_2] : memref<128x256xbf16, #tpu.memory_space<vmem>>, vector<128x256xbf16>
    %cst = arith.constant dense<0.000000e+00> : vector<16x256xf32>
    %2 = tpu.matmul %0, %1, %cst {dimension_numbers = #tpu.dot_dimension_numbers<[1], [0], [0], [1], [0, 0, 1, 1], [], []>} : vector<16x128xbf16>, vector<128x256xbf16>, vector<16x256xf32> -> vector<16x256xf32>
    %c0_3 = arith.constant 0 : index
    %c0_4 = arith.constant 0 : index
    %3 = vector.load %arg4[%c0_3, %c0_4] : memref<1x256xf32, #tpu.memory_space<vmem>>, vector<1x256xf32>
    %4 = vector.broadcast %3 : vector<1x256xf32> to vector<16x256xf32>
    %5 = arith.addf %2, %4 : vector<16x256xf32>
    %6 = arith.mulf %5, %5 : vector<16x256xf32>
    %7 = arith.mulf %5, %6 : vector<16x256xf32>
    %cst_5 = arith.constant 4.471500e-02 : f32
    %8 = vector.broadcast %cst_5 : f32 to vector<16x256xf32>
    %9 = arith.mulf %8, %7 : vector<16x256xf32>
    %10 = arith.addf %5, %9 : vector<16x256xf32>
    %cst_6 = arith.constant 0.797884583 : f32
    %11 = vector.broadcast %cst_6 : f32 to vector<16x256xf32>
    %12 = arith.mulf %11, %10 : vector<16x256xf32>
    %13 = math.tanh %12 : vector<16x256xf32>
    %cst_7 = arith.constant 1.000000e+00 : f32
    %14 = vector.broadcast %cst_7 : f32 to vector<16x256xf32>
    %15 = arith.addf %14, %13 : vector<16x256xf32>
    %cst_8 = arith.constant 5.000000e-01 : f32
    %16 = vector.broadcast %cst_8 : f32 to vector<16x256xf32>
    %17 = arith.mulf %16, %15 : vector<16x256xf32>
    %18 = arith.mulf %5, %17 : vector<16x256xf32>
    %19 = arith.truncf %18 : vector<16x256xf32> to vector<16x256xbf16>
    %c0_9 = arith.constant 0 : index
    %c0_10 = arith.constant 0 : index
    %20 = vector.load %arg5[%c0_9, %c0_10] : memref<16x256xbf16, #tpu.memory_space<vmem>>, vector<16x256xbf16>
    tpu.vector_store %arg5[%c0_9, %c0_10], %19 {strides = array<i32>} : memref<16x256xbf16, #tpu.memory_space<vmem>>, vector<16x256xbf16>,
    return
  }
  func.func @transform_0(%arg0: i32, %arg1: i32) -> (i32, i32) {
    %c0_i32 = arith.constant 0 : i32
    %c0_i32_0 = arith.constant 0 : i32
    return %arg0, %c0_i32 : i32, i32
  }
  func.func @transform_1(%arg0: i32, %arg1: i32) -> (i32, i32) {
    %c0_i32 = arith.constant 0 : i32
    %c0_i32_0 = arith.constant 0 : i32
    return %c0_i32, %arg1 : i32, i32
  }
  func.func @transform_2(%arg0: i32, %arg1: i32) -> (i32, i32) {
    %c0_i32 = arith.constant 0 : i32
    %c0_i32_0 = arith.constant 0 : i32
    return %c0_i32, %arg1 : i32, i32
  }
  func.func @transform_3(%arg0: i32, %arg1: i32) -> (i32, i32) {
    %c0_i32 = arith.constant 0 : i32
    return %arg0, %arg1 : i32, i32
  }
}

module attributes {stable_mosaic.version = 11 : i64} {
  func.func @_linear_res_ln_single_kernel(%arg0: i32, %arg1: memref<16x256xbf16, #tpu.memory_space<vmem>>, %arg2: memref<256x128xbf16, #tpu.memory_space<vmem>>, %arg3: memref<1x128xf32, #tpu.memory_space<vmem>>, %arg4: memref<16x128xbf16, #tpu.memory_space<vmem>>, %arg5: memref<1x128xf32, #tpu.memory_space<vmem>>, %arg6: memref<1x128xf32, #tpu.memory_space<vmem>>, %arg7: memref<16x128xbf16, #tpu.memory_space<vmem>>) attributes {dimension_semantics = [#tpu.dimension_semantics<parallel>], iteration_bounds = array<i64: 1>, scalar_prefetch = 0 : i64, scratch_operands = 0 : i64, tpu.core_type = #tpu.core_type<tc>, window_params = [{transform_indices = @transform_0, window_bounds = array<i64: 16, 256>}, {pipeline_mode = #tpu.pipeline_mode<synchronous>, transform_indices = @transform_1, window_bounds = array<i64: 256, 128>}, {pipeline_mode = #tpu.pipeline_mode<synchronous>, transform_indices = @transform_2, window_bounds = array<i64: 1, 128>}, {transform_indices = @transform_3, window_bounds = array<i64: 16, 128>}, {pipeline_mode = #tpu.pipeline_mode<synchronous>, transform_indices = @transform_4, window_bounds = array<i64: 1, 128>}, {pipeline_mode = #tpu.pipeline_mode<synchronous>, transform_indices = @transform_5, window_bounds = array<i64: 1, 128>}, {transform_indices = @transform_6, window_bounds = array<i64: 16, 128>}]} {
    %c0 = arith.constant 0 : index
    %c0_0 = arith.constant 0 : index
    %0 = vector.load %arg1[%c0, %c0_0] : memref<16x256xbf16, #tpu.memory_space<vmem>>, vector<16x256xbf16>
    %c0_1 = arith.constant 0 : index
    %c0_2 = arith.constant 0 : index
    %1 = vector.load %arg2[%c0_1, %c0_2] : memref<256x128xbf16, #tpu.memory_space<vmem>>, vector<256x128xbf16>
    %cst = arith.constant dense<0.000000e+00> : vector<16x128xf32>
    %2 = tpu.matmul %0, %1, %cst {dimension_numbers = #tpu.dot_dimension_numbers<[1], [0], [0], [1], [0, 0, 1, 1], [], []>} : vector<16x256xbf16>, vector<256x128xbf16>, vector<16x128xf32> -> vector<16x128xf32>
    %c0_3 = arith.constant 0 : index
    %c0_4 = arith.constant 0 : index
    %3 = vector.load %arg3[%c0_3, %c0_4] : memref<1x128xf32, #tpu.memory_space<vmem>>, vector<1x128xf32>
    %4 = vector.broadcast %3 : vector<1x128xf32> to vector<16x128xf32>
    %5 = arith.addf %2, %4 : vector<16x128xf32>
    %c0_5 = arith.constant 0 : index
    %c0_6 = arith.constant 0 : index
    %6 = vector.load %arg4[%c0_5, %c0_6] : memref<16x128xbf16, #tpu.memory_space<vmem>>, vector<16x128xbf16>
    %7 = arith.extf %6 : vector<16x128xbf16> to vector<16x128xf32>
    %8 = arith.addf %5, %7 : vector<16x128xf32>
    %cst_7 = arith.constant dense<0.000000e+00> : vector<16xf32>
    %9 = vector.multi_reduction <add>, %8, %cst_7 [1] : vector<16x128xf32> to vector<16xf32>
    %10 = vector.shape_cast %9 : vector<16xf32> to vector<16x1xf32>
    %cst_8 = arith.constant 1.280000e+02 : f32
    %11 = vector.broadcast %cst_8 : f32 to vector<16x1xf32>
    %12 = arith.divf %10, %11 : vector<16x1xf32>
    %13 = vector.broadcast %12 : vector<16x1xf32> to vector<16x128xf32>
    %14 = arith.subf %8, %13 : vector<16x128xf32>
    %15 = arith.mulf %14, %14 : vector<16x128xf32>
    %cst_9 = arith.constant dense<0.000000e+00> : vector<16xf32>
    %16 = vector.multi_reduction <add>, %15, %cst_9 [1] : vector<16x128xf32> to vector<16xf32>
    %17 = vector.shape_cast %16 : vector<16xf32> to vector<16x1xf32>
    %cst_10 = arith.constant 1.280000e+02 : f32
    %18 = vector.broadcast %cst_10 : f32 to vector<16x1xf32>
    %19 = arith.divf %17, %18 : vector<16x1xf32>
    %20 = vector.broadcast %12 : vector<16x1xf32> to vector<16x128xf32>
    %21 = arith.subf %8, %20 : vector<16x128xf32>
    %cst_11 = arith.constant 9.99999996E-13 : f32
    %22 = vector.broadcast %cst_11 : f32 to vector<16x1xf32>
    %23 = arith.addf %19, %22 : vector<16x1xf32>
    %24 = math.rsqrt %23 : vector<16x1xf32>
    %25 = vector.broadcast %24 : vector<16x1xf32> to vector<16x128xf32>
    %26 = arith.mulf %21, %25 : vector<16x128xf32>
    %c0_12 = arith.constant 0 : index
    %c0_13 = arith.constant 0 : index
    %27 = vector.load %arg5[%c0_12, %c0_13] : memref<1x128xf32, #tpu.memory_space<vmem>>, vector<1x128xf32>
    %28 = vector.broadcast %27 : vector<1x128xf32> to vector<16x128xf32>
    %29 = arith.mulf %26, %28 : vector<16x128xf32>
    %c0_14 = arith.constant 0 : index
    %c0_15 = arith.constant 0 : index
    %30 = vector.load %arg6[%c0_14, %c0_15] : memref<1x128xf32, #tpu.memory_space<vmem>>, vector<1x128xf32>
    %31 = vector.broadcast %30 : vector<1x128xf32> to vector<16x128xf32>
    %32 = arith.addf %29, %31 : vector<16x128xf32>
    %33 = arith.truncf %32 : vector<16x128xf32> to vector<16x128xbf16>
    %c0_16 = arith.constant 0 : index
    %c0_17 = arith.constant 0 : index
    %34 = vector.load %arg7[%c0_16, %c0_17] : memref<16x128xbf16, #tpu.memory_space<vmem>>, vector<16x128xbf16>
    tpu.vector_store %arg7[%c0_16, %c0_17], %33 {strides = array<i32>} : memref<16x128xbf16, #tpu.memory_space<vmem>>, vector<16x128xbf16>,
    return
  }
  func.func @transform_0(%arg0: i32) -> (i32, i32) {
    %c0_i32 = arith.constant 0 : i32
    %c0_i32_0 = arith.constant 0 : i32
    return %arg0, %c0_i32 : i32, i32
  }
  func.func @transform_1(%arg0: i32) -> (i32, i32) {
    %c0_i32 = arith.constant 0 : i32
    %c0_i32_0 = arith.constant 0 : i32
    %c0_i32_1 = arith.constant 0 : i32
    return %c0_i32, %c0_i32_0 : i32, i32
  }
  func.func @transform_2(%arg0: i32) -> (i32, i32) {
    %c0_i32 = arith.constant 0 : i32
    %c0_i32_0 = arith.constant 0 : i32
    %c0_i32_1 = arith.constant 0 : i32
    return %c0_i32, %c0_i32_0 : i32, i32
  }
  func.func @transform_3(%arg0: i32) -> (i32, i32) {
    %c0_i32 = arith.constant 0 : i32
    %c0_i32_0 = arith.constant 0 : i32
    return %arg0, %c0_i32 : i32, i32
  }
  func.func @transform_4(%arg0: i32) -> (i32, i32) {
    %c0_i32 = arith.constant 0 : i32
    %c0_i32_0 = arith.constant 0 : i32
    %c0_i32_1 = arith.constant 0 : i32
    return %c0_i32, %c0_i32_0 : i32, i32
  }
  func.func @transform_5(%arg0: i32) -> (i32, i32) {
    %c0_i32 = arith.constant 0 : i32
    %c0_i32_0 = arith.constant 0 : i32
    %c0_i32_1 = arith.constant 0 : i32
    return %c0_i32, %c0_i32_0 : i32, i32
  }
  func.func @transform_6(%arg0: i32) -> (i32, i32) {
    %c0_i32 = arith.constant 0 : i32
    %c0_i32_0 = arith.constant 0 : i32
    return %arg0, %c0_i32 : i32, i32
  }
}

module attributes {stable_mosaic.version = 11 : i64} {
  func.func @_pooler_projection_kernel(%arg0: memref<2x128xbf16, #tpu.memory_space<vmem>>, %arg1: memref<128x128xbf16, #tpu.memory_space<vmem>>, %arg2: memref<1x128xf32, #tpu.memory_space<vmem>>, %arg3: memref<128x128xbf16, #tpu.memory_space<vmem>>, %arg4: memref<1x128xf32, #tpu.memory_space<vmem>>, %arg5: memref<128x128xbf16, #tpu.memory_space<vmem>>, %arg6: memref<1x128xf32, #tpu.memory_space<vmem>>, %arg7: memref<2x128xf32, #tpu.memory_space<vmem>>, %arg8: memref<2x128xf32, #tpu.memory_space<vmem>>) attributes {dimension_semantics = [], scalar_prefetch = 0 : i64, scratch_operands = 0 : i64, tpu.core_type = #tpu.core_type<tc>} {
    %c0 = arith.constant 0 : index
    %c0_0 = arith.constant 0 : index
    %0 = vector.load %arg0[%c0, %c0_0] : memref<2x128xbf16, #tpu.memory_space<vmem>>, vector<2x128xbf16>
    %c0_1 = arith.constant 0 : index
    %c0_2 = arith.constant 0 : index
    %1 = vector.load %arg1[%c0_1, %c0_2] : memref<128x128xbf16, #tpu.memory_space<vmem>>, vector<128x128xbf16>
    %cst = arith.constant dense<0.000000e+00> : vector<2x128xf32>
    %2 = tpu.matmul %0, %1, %cst {dimension_numbers = #tpu.dot_dimension_numbers<[1], [0], [0], [1], [0, 0, 1, 1], [], []>} : vector<2x128xbf16>, vector<128x128xbf16>, vector<2x128xf32> -> vector<2x128xf32>
    %c0_3 = arith.constant 0 : index
    %c0_4 = arith.constant 0 : index
    %3 = vector.load %arg2[%c0_3, %c0_4] : memref<1x128xf32, #tpu.memory_space<vmem>>, vector<1x128xf32>
    %4 = vector.broadcast %3 : vector<1x128xf32> to vector<2x128xf32>
    %5 = arith.addf %2, %4 : vector<2x128xf32>
    %6 = math.tanh %5 : vector<2x128xf32>
    %c0_5 = arith.constant 0 : index
    %c0_6 = arith.constant 0 : index
    %7 = vector.load %arg7[%c0_5, %c0_6] : memref<2x128xf32, #tpu.memory_space<vmem>>, vector<2x128xf32>
    tpu.vector_store %arg7[%c0_5, %c0_6], %6 {strides = array<i32>} : memref<2x128xf32, #tpu.memory_space<vmem>>, vector<2x128xf32>,
    %8 = arith.truncf %6 : vector<2x128xf32> to vector<2x128xbf16>
    %c0_7 = arith.constant 0 : index
    %c0_8 = arith.constant 0 : index
    %9 = vector.load %arg3[%c0_7, %c0_8] : memref<128x128xbf16, #tpu.memory_space<vmem>>, vector<128x128xbf16>
    %cst_9 = arith.constant dense<0.000000e+00> : vector<2x128xf32>
    %10 = tpu.matmul %8, %9, %cst_9 {dimension_numbers = #tpu.dot_dimension_numbers<[1], [0], [0], [1], [0, 0, 1, 1], [], []>} : vector<2x128xbf16>, vector<128x128xbf16>, vector<2x128xf32> -> vector<2x128xf32>
    %c0_10 = arith.constant 0 : index
    %c0_11 = arith.constant 0 : index
    %11 = vector.load %arg4[%c0_10, %c0_11] : memref<1x128xf32, #tpu.memory_space<vmem>>, vector<1x128xf32>
    %12 = vector.broadcast %11 : vector<1x128xf32> to vector<2x128xf32>
    %13 = arith.addf %10, %12 : vector<2x128xf32>
    %cst_12 = arith.constant 0.000000e+00 : f32
    %14 = vector.broadcast %cst_12 : f32 to vector<2x128xf32>
    %15 = arith.maximumf %13, %14 : vector<2x128xf32>
    %16 = arith.truncf %15 : vector<2x128xf32> to vector<2x128xbf16>
    %c0_13 = arith.constant 0 : index
    %c0_14 = arith.constant 0 : index
    %17 = vector.load %arg5[%c0_13, %c0_14] : memref<128x128xbf16, #tpu.memory_space<vmem>>, vector<128x128xbf16>
    %cst_15 = arith.constant dense<0.000000e+00> : vector<2x128xf32>
    %18 = tpu.matmul %16, %17, %cst_15 {dimension_numbers = #tpu.dot_dimension_numbers<[1], [0], [0], [1], [0, 0, 1, 1], [], []>} : vector<2x128xbf16>, vector<128x128xbf16>, vector<2x128xf32> -> vector<2x128xf32>
    %c0_16 = arith.constant 0 : index
    %c0_17 = arith.constant 0 : index
    %19 = vector.load %arg6[%c0_16, %c0_17] : memref<1x128xf32, #tpu.memory_space<vmem>>, vector<1x128xf32>
    %20 = vector.broadcast %19 : vector<1x128xf32> to vector<2x128xf32>
    %21 = arith.addf %18, %20 : vector<2x128xf32>
    %c0_18 = arith.constant 0 : index
    %c0_19 = arith.constant 0 : index
    %22 = vector.load %arg8[%c0_18, %c0_19] : memref<2x128xf32, #tpu.memory_space<vmem>>, vector<2x128xf32>
    tpu.vector_store %arg8[%c0_18, %c0_19], %21 {strides = array<i32>} : memref<2x128xf32, #tpu.memory_space<vmem>>, vector<2x128xf32>,
    return
  }
}

</mosaic_0001>

<bundles_post_ra>
// kernel: bert_embedding_model.12
= control target key start
LH: loop header
LB: loop body
LE: loop exit
PB: predicated region body
PF: predicated region fallthrough
CT: control target
= control target key end

     0   :  { %s121_s0 = inlined_call_operand.vmem [shape: f32[16,128], index: 0, kind: input, shape index: {}]   ;;  %s122_s1 = inlined_call_operand.vmem [shape: f32[1,128], index: 1, kind: input, shape index: {}]   ;;  %s123_s2 = inlined_call_operand.vmem [shape: f32[1,128], index: 2, kind: input, shape index: {}]   ;;  %s124_s3 = inlined_call_operand.vmem [shape: bf16[16,128], index: 3, kind: output, shape index: {}]  }
   0x1   :  { %v14_v0 = vld [vmem:[%s121_s0] sm:$0xff]  ;;  %v15_v1 = vld [vmem:[%s121_s0 + $0x8] sm:$0xff] }
   0x2   :  { %16 = vadd.xlane.f32.xlu0 %v14_v0  ;;  %v71_v18 = vld [vmem:[%s122_s1] ss:$0 sm:$0xff] }
   0x3   :  { %v72_v22 = vld [vmem:[%s123_s2] ss:$0 sm:$0xff] }
   0x6   :  { %18 = vadd.xlane.f32.xlu0 %v15_v1 }
  0x8b   :  { %v17_v2 = vpop.xlane.xlu0 %16 }
  0x8c   :  { %v21_v3 = vmul.f32 0.0078125, %v17_v2 }
  0x8e   :  { %v23_v4 = vsub.f32 %v14_v0, %v21_v3 }
  0x8f   :  { %v19_v5 = vpop.xlane.xlu0 %18 }
  0x90   :  { %v22_v6 = vmul.f32 0.0078125, %v19_v5  ;;  %v25_v7 = vmul.f32 %v23_v4, %v23_v4 }
  0x92   :  { %v24_v8 = vsub.f32 %v15_v1, %v22_v6  ;;  %27 = vadd.xlane.f32.xlu1 %v25_v7 }
  0x94   :  { %v26_v9 = vmul.f32 %v24_v8, %v24_v8 }
  0x96   :  { %29 = vadd.xlane.f32.xlu1 %v26_v9 }
 0x11b   :  { %v28_v10 = vpop.xlane.xlu1 %27 }
 0x11c   :  { %v31_v11 = vmul.f32 0.0078125, %v28_v10 }
 0x11e   :  { %v33_v12 = vadd.f32 1e-12, %v31_v11 }
 0x11f   :  { %v30_v13 = vpop.xlane.xlu1 %29 }
 0x120   :  { %82 = vrsqrt.f32 %v33_v12  ;;  %v32_v14 = vmul.f32 0.0078125, %v30_v13 }
 0x122   :  { %v34_v15 = vadd.f32 1e-12, %v32_v14 }
 0x124   :  { %84 = vrsqrt.f32 %v34_v15 }
 0x12d   :  { %v83_v16 = vpop.eup %82 }
 0x12e   :  { %v37_v17 = vmul.f32 %v83_v16, %v23_v4 }
 0x130   :  { %v46_v20 = vmul.f32 %v71_v18, %v37_v17 }
 0x131   :  { %v85_v19 = vpop.eup %84 }
 0x132   :  { %v38_v21 = vmul.f32 %v85_v19, %v24_v8  ;;  %v55_v24 = vadd.f32 %v72_v22, %v46_v20 }
 0x134   :  { %v47_v23 = vmul.f32 %v71_v18, %v38_v21 }
 0x136   :  { %v56_v25 = vadd.f32 %v72_v22, %v47_v23 }
 0x138   :  { %v80_v26 = vpack.c.bf16 %v56_v25, %v55_v24 }
 0x13a   :  { %81 = vst [vmem:[%s124_s3] sm:$0xff] %v80_v26  }

// kernel: bert_embedding_model.15
= control target key start
LH: loop header
LB: loop body
LE: loop exit
PB: predicated region body
PF: predicated region fallthrough
CT: control target
= control target key end

     0   :  { %v274_v0 = vmov 0.0   ;;  %vm275_vm0 = vmmov 0   ;;  %s353_s1 = inlined_call_operand.vmem [shape: bf16[128,128], index: 1, kind: input, shape index: {}]   ;;  %s354_s0 = inlined_call_operand.vmem [shape: bf16[16,128], index: 0, kind: input, shape index: {}]   ;;  %s355_s3 = inlined_call_operand.vmem [shape: bf16[16,128], index: 3, kind: input, shape index: {}]   ;;  %s356_s2 = inlined_call_operand.vmem [shape: f32[1,128], index: 2, kind: input, shape index: {}, may-alias: {2,5}]   ;;  %s357_s4 = inlined_call_operand.vmem [shape: f32[1,128], index: 4, kind: input, shape index: {}]   ;;  %s358_s5 = inlined_call_operand.vmem [shape: f32[1,128], index: 5, kind: input, shape index: {}, may-alias: {2,5}]   ;;  %s359_s6 = inlined_call_operand.vmem [shape: bf16[16,128], index: 6, kind: output, shape index: {}]  }
   0x1   :  { %239 = vmatprep.subr.bf16.mxu0 %v274_v0  ;;  %v261_v1 = vld [vmem:[%s353_s1 + $0x38] sm:$0xff]   ;;  %255 = vmatprep.mubr.msk.bf16.mxu0 %vm275_vm0, %v274_v0  ;;  %v262_v2 = vld [vmem:[%s353_s1 + $0x30] sm:$0xff]   ;;  %v263_v3 = vld [vmem:[%s353_s1 + $0x28] sm:$0xff]  }
   0x2   :  { %240 = vmatpush3.bf16.msra.mxu0 %v261_v1  ;;  %v264_v4 = vld [vmem:[%s353_s1 + $0x20] sm:$0xff]   ;;  %v265_v5 = vld [vmem:[%s353_s1 + $0x18] sm:$0xff]   ;;  %v266_v6 = vld [vmem:[%s353_s1 + $0x10] sm:$0xff]  }
   0x3   :  { %241 = vmatprep.subr.bf16.mxu0 %v274_v0  ;;  %v267_v7 = vld [vmem:[%s353_s1 + $0x8] sm:$0xff]   ;;  %v268_v8 = vld [vmem:[%s353_s1] sm:$0xff]  }
   0x4   :  { %v269_v9 = vld [vmem:[%s354_s0] sm:$0xff]  }
   0x5   :  { %v222_v10 = vld [vmem:[%s355_s3] sm:$0xff]  }
   0x6   :  { %242 = vmatpush3.bf16.msra.mxu0 %v262_v2  ;;  %v205_v11 = vld [vmem:[%s356_s2] ss:$0 sm:$0xff]  ;;  %v223_v12 = vunpack.c.l.bf16 %v222_v10  ;;  %v224_v17 = vunpack.c.h.bf16 %v222_v10 }
   0x7   :  { %243 = vmatprep.subr.bf16.mxu0 %v274_v0  ;;  %v215_v38 = vld [vmem:[%s357_s4] ss:$0 sm:$0xff] }
   0x8   :  { %v216_v42 = vld [vmem:[%s358_s5] ss:$0 sm:$0xff] }
   0xa   :  { %244 = vmatpush3.bf16.msra.mxu0 %v263_v3 }
   0xb   :  { %245 = vmatprep.subr.bf16.mxu0 %v274_v0 }
   0xe   :  { %246 = vmatpush3.bf16.msra.mxu0 %v264_v4 }
   0xf   :  { %247 = vmatprep.subr.bf16.mxu0 %v274_v0 }
  0x12   :  { %248 = vmatpush3.bf16.msra.mxu0 %v265_v5 }
  0x13   :  { %249 = vmatprep.subr.bf16.mxu0 %v274_v0 }
  0x16   :  { %250 = vmatpush3.bf16.msra.mxu0 %v266_v6 }
  0x17   :  { %251 = vmatprep.subr.bf16.mxu0 %v274_v0 }
  0x1a   :  { %252 = vmatpush3.bf16.msra.mxu0 %v267_v7 }
  0x1b   :  { %253 = vmatprep.subr.bf16.mxu0 %v274_v0 }
  0x1e   :  { %254 = vmatpush3.bf16.msra.mxu0 %v268_v8 }
  0x21   :  { %256 = vmatmul.mubr.bf16.vlgmr.msra.gmra.mxu0 %v269_v9 }
  0xe1   :  { %v137_v13 = vpop.f32.mrf.mxu0 }
  0xe2   :  { %v138_v14 = vadd.f32 %v205_v11, %v137_v13 }
  0xe3   :  { %v257_v15 = vpop.f32.mrf.mxu0 }
  0xe4   :  { %v148_v16 = vadd.f32 %v223_v12, %v138_v14 }
  0xe5   :  { %v140_v18 = vpop.f32.mrf.mxu0 }
  0xe6   :  { %v141_v19 = vadd.f32 %v205_v11, %v140_v18  ;;  %150 = vadd.xlane.f32.xlu0 %v148_v16 }
  0xe7   :  { %v258_v20 = vpop.f32.mrf.mxu0 }
  0xe8   :  { %v149_v21 = vadd.f32 %v224_v17, %v141_v19 }
  0xea   :  { %152 = vadd.xlane.f32.xlu0 %v149_v21 }
 0x16f   :  { %v151_v22 = vpop.xlane.xlu0 %150 }
 0x170   :  { %v155_v23 = vmul.f32 0.0078125, %v151_v22 }
 0x172   :  { %v157_v24 = vsub.f32 %v148_v16, %v155_v23 }
 0x173   :  { %v153_v25 = vpop.xlane.xlu0 %152 }
 0x174   :  { %v156_v26 = vmul.f32 0.0078125, %v153_v25  ;;  %v159_v27 = vmul.f32 %v157_v24, %v157_v24 }
 0x176   :  { %v158_v28 = vsub.f32 %v149_v21, %v156_v26  ;;  %161 = vadd.xlane.f32.xlu1 %v159_v27 }
 0x178   :  { %v160_v29 = vmul.f32 %v158_v28, %v158_v28 }
 0x17a   :  { %163 = vadd.xlane.f32.xlu1 %v160_v29 }
 0x1ff   :  { %v162_v30 = vpop.xlane.xlu1 %161 }
 0x200   :  { %v165_v31 = vmul.f32 0.0078125, %v162_v30 }
 0x202   :  { %v167_v32 = vadd.f32 1e-12, %v165_v31 }
 0x203   :  { %v164_v33 = vpop.xlane.xlu1 %163 }
 0x204   :  { %270 = vrsqrt.f32 %v167_v32  ;;  %v166_v34 = vmul.f32 0.0078125, %v164_v33 }
 0x206   :  { %v168_v35 = vadd.f32 1e-12, %v166_v34 }
 0x208   :  { %272 = vrsqrt.f32 %v168_v35 }
 0x211   :  { %v271_v36 = vpop.eup %270 }
 0x212   :  { %v171_v37 = vmul.f32 %v271_v36, %v157_v24 }
 0x214   :  { %v180_v40 = vmul.f32 %v215_v38, %v171_v37 }
 0x215   :  { %v273_v39 = vpop.eup %272 }
 0x216   :  { %v172_v41 = vmul.f32 %v273_v39, %v158_v28  ;;  %v189_v44 = vadd.f32 %v216_v42, %v180_v40 }
 0x218   :  { %v181_v43 = vmul.f32 %v215_v38, %v172_v41 }
 0x21a   :  { %v190_v45 = vadd.f32 %v216_v42, %v181_v43 }
 0x21c   :  { %v228_v46 = vpack.c.bf16 %v190_v45, %v189_v44 }
 0x21e   :  { %229 = vst [vmem:[%s359_s6] sm:$0xff] %v228_v46  }

// kernel: bert_embedding_model.14
= control target key start
LH: loop header
LB: loop body
LE: loop exit
PB: predicated region body
PF: predicated region fallthrough
CT: control target
= control target key end

     0   :  { %s860_s15 = smov 0   ;;  %s862_s16 = smov 0   ;;  %s933_s0 = inlined_call_operand.vmem [shape: bf16[16,384], index: 0, kind: input, shape index: {}, may-alias: {0,1,2}]   ;;  %s934_s1 = inlined_call_operand.vmem [shape: bf16[16,384], index: 1, kind: input, shape index: {}, may-alias: {0,1,2}]   ;;  %s935_s2 = inlined_call_operand.vmem [shape: bf16[16,384], index: 2, kind: input, shape index: {}, may-alias: {0,1,2}]   ;;  %s936_s3 = inlined_call_operand.vmem [shape: f32[2,1,8], index: 3, kind: input, shape index: {}]   ;;  %s937_s4 = inlined_call_operand.vmem [shape: bf16[16,128], index: 4, kind: output, shape index: {}]  }
   0x1   :  { %s864_s17 = smov 0  }
   0x2 LB: > { %s33_s18 = sadd.s32 1, %s826_s16  ;;  %p716_p0 = scmp.ge.s32.totalorder %s830_s17, 1  ;;  %s830_s17 = sphi %s864_s17, %s14_s17   ;;  %s826_s16 = sphi %s862_s16, %s939_s16   ;;  %s822_s15 = sphi %s860_s15, %s938_s15  }
   0x3   : > { %p35_p1 = scmp.ge.s32.totalorder %s33_s18, 2  ;;  %p240_p2 = scmp.lt.s32.totalorder %s830_s17, 3 }
   0x5   : > { %s941_s18 = smov (%p35_p1, %s33_s18), 0  ;;  %p241_p3 = pnand %p716_p0, %p240_p2 }
   0x6   : > { %p295_p4 = scmp.lt.s32.totalorder (!%p241_p3), %s822_s15, 1  ;;  %s834_s30 = smov (!%p241_p3), 64  }
   0x7   : > { %244 = sbr.rel (%p241_p3) target bundleno = 1364 (0x554), region = 36 }
   0xc   : > { %v832_v0 = vmov 0.0   ;;  %vm833_vm0 = vmmov 0   ;;  %s943_s15 = smov (!%p295_p4, %s822_s15), 1  ;;  %vm347_vm1 = vcmask 523264   ;;  %vm394_vm2 = vcmask 64512  }
   0xd   : > { %743 = vmatprep.subr.bf16.mxu0 %v832_v0  ;;  %745 = vmatprep.mubr.msk.bf16.mxu0 %vm833_vm0, %v832_v0  ;;  %s883_s19 = smul.u32 12, %s943_s15  ;;  %s326_s29 = scalar_lea.vmem %s936_s3, %s943_s15  ;;  %vm410_vm3 = vcmask 1043456  }
   0xe   : > { %749 = vmatprep.subr.bf16.mxu1 %v832_v0  ;;  %751 = vmatprep.mubr.msk.bf16.mxu1 %vm833_vm0, %v832_v0  ;;  %v721_v4 = vld [vmem:[%s326_s29] ss:$0 sm:$0xff]  ;;  %s720_s9 = sshll.u32 %s943_s15, 2 }
   0xf   : > { %s732_s20 = sadd.s32 4, %s883_s19  ;;  %s302_s23 = scalar_lea.vmem %s933_s0, %s883_s19 }
  0x10   : > { %s312_s26 = scalar_lea.vmem %s934_s1, %s732_s20  ;;  %v338_v3 = vld [vmem:[%s302_s23] sm:$0xf]  ;;  %s734_s5 = sadd.s32 8, %s883_s19 }
  0x11   : > { %v339_v1 = vld [vmem:[%s312_s26] sm:$0xf]  ;;  %s322_s8 = scalar_lea.vmem %s935_s2, %s734_s5  ;;  %s334_s12 = scalar_lea.vmem %s937_s4, %s720_s9 }
  0x12   : > { %v352_v2 = vsel %vm347_vm1, %v339_v1, 0  ;;  %v797_v11 = vld [vmem:[%s312_s26] ss:$0 sps:$4 sm:$0xff]  }
  0x13   : > { %744 = vmatpush3.bf16.xpose.msra.mxu0 %v352_v2  ;;  %465 = vrot.lane.b32.xlu1 %v797_v11, %s834_s30  ;;  %v798_v12 = vld [vmem:[%s302_s23] ss:$0 sps:$4 sm:$0xff]  }
  0x14   : > { %761 = vmatprep.subr.bf16.mxu0 %v832_v0  ;;  %v340_v18 = vld [vmem:[%s322_s8] sm:$0xf] }
  0x15   : > { %v412_v19 = vsel %vm410_vm3, %v340_v18, 0  ;;  %v799_v37 = vld [vmem:[%s322_s8] ss:$0 sps:$4 sm:$0xff]  }
  0x16   : > { %750 = vmatpush3.bf16.msra.mxu1 %v412_v19 }
  0x17   : > { %460 = vrot.lane.b32.xlu1 %v798_v12, %s834_s30  ;;  %755 = vmatprep.subr.bf16.mxu1 %v832_v0 }
  0x1a   : > { %746 = vmatmul.mubr.msk.bf16.vlgmr.msra.gmra.mxu0 %vm347_vm1, %v338_v3 }
  0x1b   : > { %763 = vmatprep.mubr.msk.bf16.mxu0 %vm833_vm0, %v832_v0 }
  0x85   : > { %v466_v22 = vpop.permute.xlu1 %465 }
  0x86   : > { %v471_v24 = vsel %vm347_vm1, %v466_v22, 0 }
  0x89   : > { %v461_v26 = vpop.permute.xlu1 %460 }
  0xda   : > { %v388_v5 = vpop.f32.mrf.mxu0 }
  0xdb   : > { %v389_v6 = vadd.f32 %v721_v4, %v388_v5 }
  0xdc   : > { %v747_v7 = vpop.f32.mrf.mxu0 }
  0xdd   : > { %v395_v8 = vsel %vm394_vm2, %v389_v6, -inf }
  0xde   : > { %396 = vmax.xlane.f32.xlu0 %v395_v8  ;;  %v391_v9 = vpop.f32.mrf.mxu0 }
  0xe0   : > { %v748_v10 = vpop.f32.mrf.mxu0 }
 0x167   : > { %v397_v13 = vpop.xlane.xlu0 %396 }
 0x168   : > { %v398_v14 = vsub.f32 %v389_v6, %v397_v13 }
 0x16a   : > { %v399_v15 = vmul.f32 1.442695, %v398_v14 }
 0x16c   : > { %800 = vpow2.f32 %v399_v15 }
 0x179   : > { %v801_v16 = vpop.eup %800 }
 0x17a   : > { %v401_v17 = vsel %vm394_vm2, %v801_v16, 0.0 }
 0x17b   : > { %402 = vadd.xlane.f32.xlu0 %v401_v17 }
 0x204   : > { %v403_v20 = vpop.xlane.xlu0 %402 }
 0x205   : > { %802 = vrcp.f32 %v403_v20 }
 0x212   : > { %v803_v21 = vpop.eup %802 }
 0x213   : > { %v405_v23 = vmul.f32 %v803_v21, %v801_v16 }
 0x215   : > { %v406_v25 = vpack.c.bf16 %v405_v23, %v405_v23 }
 0x217   : > { %752 = vmatmul.mubr.msk.bf16.vlgmr.msra.gmra.mxu1 %vm394_vm2, %v406_v25 }
 0x218   : > { %756 = vmatpush3.bf16.xpose.msra.mxu1 %v471_v24  ;;  %757 = vmatprep.mubr.msk.bf16.mxu1 %vm833_vm0, %v832_v0 }
 0x21f   : > { %758 = vmatmul.mubr.msk.bf16.vlgmr.msra.gmra.mxu1 %vm347_vm1, %v461_v26 }
 0x2d7   : > { %v448_v27 = vpop.f32.mrf.mxu1 }
 0x2d9   : > { %v753_v28 = vpop.f32.mrf.mxu1 }
 0x2db   : > { %v451_v29 = vpop.f32.mrf.mxu1 }
 0x2dd   : > { %v754_v30 = vpop.f32.mrf.mxu1 }
 0x2df   : > { %v507_v31 = vpop.f32.mrf.mxu1 }
 0x2e0   : > { %v508_v32 = vadd.f32 %v721_v4, %v507_v31 }
 0x2e1   : > { %v759_v33 = vpop.f32.mrf.mxu1 }
 0x2e2   : > { %v513_v34 = vsel %vm394_vm2, %v508_v32, -inf }
 0x2e3   : > { %514 = vmax.xlane.f32.xlu0 %v513_v34  ;;  %v510_v35 = vpop.f32.mrf.mxu1 }
 0x2e5   : > { %v760_v36 = vpop.f32.mrf.mxu1 }
 0x2f9   : > { %528 = vrot.lane.b32.xlu0 %v799_v37, %s834_s30 }
 0x36c   : > { %v515_v38 = vpop.xlane.xlu0 %514 }
 0x36d   : > { %v516_v39 = vsub.f32 %v508_v32, %v515_v38 }
 0x36f   : > { %v517_v40 = vmul.f32 1.442695, %v516_v39 }
 0x370   : > { %v529_v43 = vpop.permute.xlu0 %528 }
 0x371   : > { %804 = vpow2.f32 %v517_v40  ;;  %v534_v44 = vsel %vm410_vm3, %v529_v43, 0 }
 0x372   : > { %762 = vmatpush3.bf16.msra.mxu0 %v534_v44 }
 0x37e   : > { %v805_v41 = vpop.eup %804 }
 0x37f   : > { %v519_v42 = vsel %vm394_vm2, %v805_v41, 0.0 }
 0x380   : > { %520 = vadd.xlane.f32.xlu1 %v519_v42 }
 0x409   : > { %v521_v45 = vpop.xlane.xlu1 %520 }
 0x40a   : > { %806 = vrcp.f32 %v521_v45 }
 0x417   : > { %v807_v46 = vpop.eup %806 }
 0x418   : > { %v523_v47 = vmul.f32 %v807_v46, %v805_v41 }
 0x41a   : > { %v524_v48 = vpack.c.bf16 %v523_v47, %v523_v47 }
 0x41c   : > { %764 = vmatmul.mubr.msk.bf16.vlgmr.msra.gmra.mxu0 %vm394_vm2, %v524_v48 }
 0x4dc   : > { %v570_v49 = vpop.f32.mrf.mxu0 }
 0x4dd   : > { %577 = vrot.lane.b32.xlu0 %v570_v49, %s834_s30 }
 0x4de   : > { %v765_v50 = vpop.f32.mrf.mxu0 }
 0x4e0   : > { %v573_v51 = vpop.f32.mrf.mxu0 }
 0x4e2   : > { %v766_v52 = vpop.f32.mrf.mxu0 }
 0x54f   : > { %v578_v53 = vpop.permute.xlu0 %577 }
 0x550   : > { %v580_v54 = vsel %vm347_vm1, %v448_v27, %v578_v53 }
 0x551   : > { %v581_v55 = vpack.c.bf16 %v580_v54, %v580_v54 }
 0x553   : > { %582 = vst [vmem:[%s334_s12] sm:$0xf] %v581_v55 }
 0x554 PF: > { %s14_s17 = sadd.s32 1, %s830_s17   ;;  %s938_s15 = smov %s826_s16 }
 0x555   : > { %p11_p5 = scmp.ge.s32.totalorder %s14_s17, 4   ;;  %s939_s16 = smov %s941_s18 }
 0x557   :  { %13 = sbr.rel (!%p11_p5) target bundleno = 2 (0x2), region = 75 }

// kernel: bert_embedding_model.13
= control target key start
LH: loop header
LB: loop body
LE: loop exit
PB: predicated region body
PF: predicated region fallthrough
CT: control target
= control target key end

     0   :  { %v410_v0 = vmov 0.0   ;;  %vm411_vm0 = vmmov 0   ;;  %v412_v3 = vmov 0   ;;  %v51_v27 = vlaneseq  ;;  %s523_s1 = inlined_call_operand.vmem [shape: bf16[128,384], index: 1, kind: input, shape index: {}]   ;;  %s524_s0 = inlined_call_operand.vmem [shape: bf16[16,128], index: 0, kind: input, shape index: {}]   ;;  %s525_s2 = inlined_call_operand.vmem [shape: f32[1,384], index: 2, kind: input, shape index: {}]   ;;  %s526_s3 = inlined_call_operand.vmem [shape: bf16[16,384], index: 3, kind: output, shape index: {}]  }
   0x1   :  { %354 = vmatprep.subr.bf16.mxu1 %v410_v0  ;;  %v377_v1 = vld [vmem:[%s523_s1 + $0xac] ss:$12 sps:$4 sm:$0xff]   ;;  %370 = vmatprep.mubr.msk.bf16.mxu1 %vm411_vm0, %v410_v0  ;;  %v379_v2 = vld [vmem:[%s523_s1 + $0xb0] ss:$12 sps:$4 sm:$0xff]   ;;  %v380_v4 = vld [vmem:[%s523_s1 + $0xa8] ss:$12 sps:$4 sm:$0xff]  }
   0x2   :  { %232 = vmatprep.mubr.bf16.mxu0 %v412_v3  ;;  %200 = vmatprep.subr.bf16.mxu0 %v377_v1  ;;  %v381_v5 = vld [vmem:[%s523_s1 + $0x94] ss:$12 sps:$4 sm:$0xff]   ;;  %v383_v6 = vld [vmem:[%s523_s1 + $0x98] ss:$12 sps:$4 sm:$0xff]   ;;  %v384_v7 = vld [vmem:[%s523_s1 + $0x90] ss:$12 sps:$4 sm:$0xff]  }
   0x3   :  { %355 = vmatpush3.bf16.msra.mxu1 %v379_v2  ;;  %201 = vmatpush1.bf16.msra.mxu0 %v380_v4  ;;  %v385_v8 = vld [vmem:[%s523_s1 + $0x7c] ss:$12 sps:$4 sm:$0xff]   ;;  %v387_v9 = vld [vmem:[%s523_s1 + $0x80] ss:$12 sps:$4 sm:$0xff]   ;;  %v388_v10 = vld [vmem:[%s523_s1 + $0x78] ss:$12 sps:$4 sm:$0xff]  }
   0x4   :  { %356 = vmatprep.subr.bf16.mxu1 %v410_v0  ;;  %202 = vmatprep.subr.bf16.mxu0 %v381_v5  ;;  %v389_v11 = vld [vmem:[%s523_s1 + $0x64] ss:$12 sps:$4 sm:$0xff]   ;;  %v391_v12 = vld [vmem:[%s523_s1 + $0x68] ss:$12 sps:$4 sm:$0xff]   ;;  %v392_v13 = vld [vmem:[%s523_s1 + $0x60] ss:$12 sps:$4 sm:$0xff]  }
   0x5   :  { %v393_v14 = vld [vmem:[%s523_s1 + $0x4c] ss:$12 sps:$4 sm:$0xff]   ;;  %v395_v15 = vld [vmem:[%s523_s1 + $0x50] ss:$12 sps:$4 sm:$0xff]   ;;  %v396_v16 = vld [vmem:[%s523_s1 + $0x48] ss:$12 sps:$4 sm:$0xff]  }
   0x6   :  { %v397_v17 = vld [vmem:[%s523_s1 + $0x34] ss:$12 sps:$4 sm:$0xff]   ;;  %v399_v18 = vld [vmem:[%s523_s1 + $0x38] ss:$12 sps:$4 sm:$0xff]   ;;  %v400_v19 = vld [vmem:[%s523_s1 + $0x30] ss:$12 sps:$4 sm:$0xff]  }
   0x7   :  { %357 = vmatpush3.bf16.msra.mxu1 %v383_v6  ;;  %203 = vmatpush1.bf16.msra.mxu0 %v384_v7  ;;  %v401_v20 = vld [vmem:[%s523_s1 + $0x1c] ss:$12 sps:$4 sm:$0xff]   ;;  %v403_v21 = vld [vmem:[%s523_s1 + $0x20] ss:$12 sps:$4 sm:$0xff]   ;;  %v404_v22 = vld [vmem:[%s523_s1 + $0x18] ss:$12 sps:$4 sm:$0xff]  }
   0x8   :  { %358 = vmatprep.subr.bf16.mxu1 %v410_v0  ;;  %204 = vmatprep.subr.bf16.mxu0 %v385_v8  ;;  %v405_v23 = vld [vmem:[%s523_s1 + $0x4] ss:$12 sps:$4 sm:$0xff]   ;;  %v407_v24 = vld [vmem:[%s523_s1 + $0x8] ss:$12 sps:$4 sm:$0xff]   ;;  %v408_v25 = vld [vmem:[%s523_s1] ss:$12 sps:$4 sm:$0xff]  }
   0x9   :  { %v409_v26 = vld [vmem:[%s524_s0] sm:$0xff]   ;;  %v52_v28 = vshrl.u32 %v51_v27, 7 }
   0xa   :  { %v49_v30 = vld [vmem:[%s525_s2] sm:$0x7] }
   0xb   :  { %359 = vmatpush3.bf16.msra.mxu1 %v387_v9  ;;  %205 = vmatpush1.bf16.msra.mxu0 %v388_v10  ;;  %v61_v29 = vsub.s32 2, %v52_v28  ;;  %v53_v31 = vsub.s32 0, %v52_v28  ;;  %v57_v32 = vsub.s32 1, %v52_v28 }
   0xc   :  { %360 = vmatprep.subr.bf16.mxu1 %v410_v0  ;;  %206 = vmatprep.subr.bf16.mxu0 %v389_v11 }
   0xd   :  { %v62_v33 = vrot.slane %v49_v30, %v61_v29  ;;  %v54_v35 = vrot.slane %v49_v30, %v53_v31  ;;  %v58_v36 = vrot.slane %v49_v30, %v57_v32 }
   0xf   :  { %361 = vmatpush3.bf16.msra.mxu1 %v391_v12  ;;  %207 = vmatpush1.bf16.msra.mxu0 %v392_v13 }
  0x10   :  { %362 = vmatprep.subr.bf16.mxu1 %v410_v0  ;;  %208 = vmatprep.subr.bf16.mxu0 %v393_v14 }
  0x13   :  { %363 = vmatpush3.bf16.msra.mxu1 %v395_v15  ;;  %209 = vmatpush1.bf16.msra.mxu0 %v396_v16 }
  0x14   :  { %364 = vmatprep.subr.bf16.mxu1 %v410_v0  ;;  %210 = vmatprep.subr.bf16.mxu0 %v397_v17 }
  0x17   :  { %365 = vmatpush3.bf16.msra.mxu1 %v399_v18  ;;  %211 = vmatpush1.bf16.msra.mxu0 %v400_v19 }
  0x18   :  { %366 = vmatprep.subr.bf16.mxu1 %v410_v0  ;;  %212 = vmatprep.subr.bf16.mxu0 %v401_v20 }
  0x1b   :  { %367 = vmatpush3.bf16.msra.mxu1 %v403_v21  ;;  %213 = vmatpush1.bf16.msra.mxu0 %v404_v22 }
  0x1c   :  { %368 = vmatprep.subr.bf16.mxu1 %v410_v0  ;;  %214 = vmatprep.subr.bf16.mxu0 %v405_v23 }
  0x1f   :  { %369 = vmatpush3.bf16.msra.mxu1 %v407_v24  ;;  %215 = vmatpush1.bf16.msra.mxu0 %v408_v25 }
  0x22   :  { %371 = vmatmul.mubr.bf16.vlgmr.msra.gmra.mxu1 %v409_v26  ;;  %233 = vmatmul.mubr.bf16.vlgmr.msra.gmra.mxu0 %v409_v26 }
  0xe2   :  { %v277_v34 = vpop.f32.mrf.mxu1  ;;  %v234_v38 = vpop.f32.mrf.mxu0 }
  0xe3   :  { %v278_v37 = vadd.f32 %v277_v34, %v62_v33  ;;  %v235_v42 = vadd.f32 %v234_v38, %v54_v35 }
  0xe4   :  { %v372_v39 = vpop.f32.mrf.mxu1  ;;  %v236_v41 = vpop.f32.mrf.mxu0 }
  0xe5   :  { %v342_v40 = vpack.c.bf16 %v278_v37, %v278_v37  ;;  %v237_v43 = vadd.f32 %v236_v41, %v58_v36 }
  0xe6   :  { %v280_v44 = vpop.f32.mrf.mxu1  ;;  %v238_v46 = vpop.f32.mrf.mxu0 }
  0xe7   :  { %305 = vst [vmem:[%s526_s3 + $0x8] sm:$0xf] %v342_v40  ;;  %v281_v45 = vadd.f32 %v280_v44, %v62_v33  ;;  %v341_v47 = vpack.c.bf16 %v237_v43, %v235_v42  ;;  %v239_v51 = vadd.f32 %v238_v46, %v54_v35 }
  0xe8   :  { %v373_v48 = vpop.f32.mrf.mxu1  ;;  %v240_v50 = vpop.f32.mrf.mxu0 }
  0xe9   :  { %v344_v49 = vpack.c.bf16 %v281_v45, %v281_v45  ;;  %304 = vst [vmem:[%s526_s3] sm:$0xff] %v341_v47  ;;  %v241_v52 = vadd.f32 %v240_v50, %v58_v36 }
  0xeb   :  { %307 = vst [vmem:[%s526_s3 + $0x14] sm:$0xf] %v344_v49  ;;  %v343_v53 = vpack.c.bf16 %v241_v52, %v239_v51 }
  0xed   :  { %306 = vst [vmem:[%s526_s3 + $0xc] sm:$0xff] %v343_v53 }

// kernel: bert_embedding_model.16
= control target key start
LH: loop header
LB: loop body
LE: loop exit
PB: predicated region body
PF: predicated region fallthrough
CT: control target
= control target key end

     0   :  { %v283_v1 = vmov 0   ;;  %v35_v18 = vlaneseq  ;;  %s364_s1 = inlined_call_operand.vmem [shape: bf16[128,256], index: 1, kind: input, shape index: {}]   ;;  %s365_s0 = inlined_call_operand.vmem [shape: bf16[16,128], index: 0, kind: input, shape index: {}]   ;;  %s366_s2 = inlined_call_operand.vmem [shape: f32[1,256], index: 2, kind: input, shape index: {}]   ;;  %s367_s3 = inlined_call_operand.vmem [shape: bf16[16,256], index: 3, kind: output, shape index: {}]  }
   0x1   :  { %v250_v0 = vld [vmem:[%s364_s1 + $0x74] ss:$8 sps:$4 sm:$0xff]   ;;  %163 = vmatprep.mubr.bf16.mxu0 %v283_v1  ;;  %v252_v2 = vld [vmem:[%s364_s1 + $0x70] ss:$8 sps:$4 sm:$0xff]   ;;  %v253_v3 = vld [vmem:[%s364_s1 + $0x64] ss:$8 sps:$4 sm:$0xff]  }
   0x2   :  { %131 = vmatprep.subr.bf16.mxu0 %v250_v0  ;;  %v255_v4 = vld [vmem:[%s364_s1 + $0x60] ss:$8 sps:$4 sm:$0xff]   ;;  %v256_v5 = vld [vmem:[%s364_s1 + $0x54] ss:$8 sps:$4 sm:$0xff]   ;;  %v258_v6 = vld [vmem:[%s364_s1 + $0x50] ss:$8 sps:$4 sm:$0xff]  }
   0x3   :  { %132 = vmatpush1.bf16.msra.mxu0 %v252_v2  ;;  %v259_v7 = vld [vmem:[%s364_s1 + $0x44] ss:$8 sps:$4 sm:$0xff]   ;;  %v261_v8 = vld [vmem:[%s364_s1 + $0x40] ss:$8 sps:$4 sm:$0xff]   ;;  %v262_v9 = vld [vmem:[%s364_s1 + $0x34] ss:$8 sps:$4 sm:$0xff]  }
   0x4   :  { %133 = vmatprep.subr.bf16.mxu0 %v253_v3  ;;  %v264_v10 = vld [vmem:[%s364_s1 + $0x30] ss:$8 sps:$4 sm:$0xff]   ;;  %v265_v11 = vld [vmem:[%s364_s1 + $0x24] ss:$8 sps:$4 sm:$0xff]   ;;  %v267_v12 = vld [vmem:[%s364_s1 + $0x20] ss:$8 sps:$4 sm:$0xff]  }
   0x5   :  { %v268_v13 = vld [vmem:[%s364_s1 + $0x14] ss:$8 sps:$4 sm:$0xff]   ;;  %v270_v14 = vld [vmem:[%s364_s1 + $0x10] ss:$8 sps:$4 sm:$0xff]   ;;  %v271_v15 = vld [vmem:[%s364_s1 + $0x4] ss:$8 sps:$4 sm:$0xff]  }
   0x6   :  { %v273_v16 = vld [vmem:[%s364_s1] ss:$8 sps:$4 sm:$0xff]   ;;  %v36_v19 = vshrl.u32 %v35_v18, 7 }
   0x7   :  { %134 = vmatpush1.bf16.msra.mxu0 %v255_v4  ;;  %v274_v17 = vld [vmem:[%s365_s0] sm:$0xff]  }
   0x8   :  { %135 = vmatprep.subr.bf16.mxu0 %v256_v5  ;;  %v37_v20 = vsub.s32 0, %v36_v19  ;;  %v33_v21 = vld [vmem:[%s366_s2] sm:$0x3]  ;;  %v41_v22 = vsub.s32 1, %v36_v19 }
   0xa   :  { %v38_v23 = vrot.slane %v33_v21, %v37_v20  ;;  %v42_v24 = vrot.slane %v33_v21, %v41_v22 }
   0xb   :  { %136 = vmatpush1.bf16.msra.mxu0 %v258_v6 }
   0xc   :  { %137 = vmatprep.subr.bf16.mxu0 %v259_v7 }
   0xf   :  { %138 = vmatpush1.bf16.msra.mxu0 %v261_v8 }
  0x10   :  { %139 = vmatprep.subr.bf16.mxu0 %v262_v9 }
  0x13   :  { %140 = vmatpush1.bf16.msra.mxu0 %v264_v10 }
  0x14   :  { %141 = vmatprep.subr.bf16.mxu0 %v265_v11 }
  0x17   :  { %142 = vmatpush1.bf16.msra.mxu0 %v267_v12 }
  0x18   :  { %143 = vmatprep.subr.bf16.mxu0 %v268_v13 }
  0x1b   :  { %144 = vmatpush1.bf16.msra.mxu0 %v270_v14 }
  0x1c   :  { %145 = vmatprep.subr.bf16.mxu0 %v271_v15 }
  0x1f   :  { %146 = vmatpush1.bf16.msra.mxu0 %v273_v16 }
  0x22   :  { %164 = vmatmul.mubr.bf16.vlgmr.msra.gmra.mxu0 %v274_v17 }
  0xe2   :  { %v165_v25 = vpop.f32.mrf.mxu0 }
  0xe3   :  { %v166_v26 = vadd.f32 %v165_v25, %v38_v23 }
  0xe4   :  { %v167_v27 = vpop.f32.mrf.mxu0 }
  0xe5   :  { %v174_v28 = vmul.f32 %v166_v26, %v166_v26  ;;  %v168_v29 = vadd.f32 %v167_v27, %v42_v24 }
  0xe6   :  { %v169_v30 = vpop.f32.mrf.mxu0 }
  0xe7   :  { %v178_v31 = vmul.f32 %v174_v28, %v166_v26  ;;  %v175_v32 = vmul.f32 %v168_v29, %v168_v29  ;;  %v170_v33 = vadd.f32 %v169_v30, %v38_v23 }
  0xe8   :  { %v171_v34 = vpop.f32.mrf.mxu0 }
  0xe9   :  { %v182_v35 = vmul.f32 0.044715, %v178_v31  ;;  %v179_v36 = vmul.f32 %v175_v32, %v168_v29  ;;  %v176_v37 = vmul.f32 %v170_v33, %v170_v33  ;;  %v172_v38 = vadd.f32 %v171_v34, %v42_v24 }
  0xeb   :  { %v186_v39 = vadd.f32 %v182_v35, %v166_v26  ;;  %v183_v40 = vmul.f32 0.044715, %v179_v36  ;;  %v180_v41 = vmul.f32 %v176_v37, %v170_v33  ;;  %v177_v42 = vmul.f32 %v172_v38, %v172_v38 }
  0xed   :  { %v190_v43 = vmul.f32 0.7978846, %v186_v39  ;;  %v187_v44 = vadd.f32 %v183_v40, %v168_v29  ;;  %v184_v45 = vmul.f32 0.044715, %v180_v41  ;;  %v181_v46 = vmul.f32 %v177_v42, %v172_v38 }
  0xef   :  { %275 = vtanh.f32 %v190_v43  ;;  %v191_v47 = vmul.f32 0.7978846, %v187_v44  ;;  %v188_v48 = vadd.f32 %v184_v45, %v170_v33  ;;  %v185_v49 = vmul.f32 0.044715, %v181_v46 }
  0xf1   :  { %277 = vtanh.f32 %v191_v47  ;;  %v192_v50 = vmul.f32 0.7978846, %v188_v48  ;;  %v189_v51 = vadd.f32 %v185_v49, %v172_v38 }
  0xf3   :  { %279 = vtanh.f32 %v192_v50  ;;  %v193_v52 = vmul.f32 0.7978846, %v189_v51 }
  0xf5   :  { %281 = vtanh.f32 %v193_v52 }
  0xfc   :  { %v276_v53 = vpop.eup %275 }
  0xfd   :  { %v198_v54 = vadd.f32 1.0, %v276_v53 }
  0xfe   :  { %v278_v55 = vpop.eup %277 }
  0xff   :  { %v202_v56 = vmul.f32 0.5, %v198_v54  ;;  %v199_v57 = vadd.f32 1.0, %v278_v55 }
 0x100   :  { %v280_v58 = vpop.eup %279 }
 0x101   :  { %v203_v59 = vmul.f32 0.5, %v199_v57  ;;  %v200_v60 = vadd.f32 1.0, %v280_v58  ;;  %v206_v62 = vmul.f32 %v202_v56, %v166_v26 }
 0x102   :  { %v282_v61 = vpop.eup %281 }
 0x103   :  { %v207_v63 = vmul.f32 %v203_v59, %v168_v29  ;;  %v204_v0 = vmul.f32 0.5, %v200_v60  ;;  %v201_v1 = vadd.f32 1.0, %v282_v61 }
 0x105   :  { %v247_v2 = vpack.c.bf16 %v207_v63, %v206_v62  ;;  %v205_v3 = vmul.f32 0.5, %v201_v1  ;;  %v208_v4 = vmul.f32 %v204_v0, %v170_v33 }
 0x107   :  { %222 = vst [vmem:[%s367_s3] sm:$0xff] %v247_v2  ;;  %v209_v5 = vmul.f32 %v205_v3, %v172_v38 }
 0x109   :  { %v248_v6 = vpack.c.bf16 %v209_v5, %v208_v4 }
 0x10b   :  { %223 = vst [vmem:[%s367_s3 + $0x8] sm:$0xff] %v248_v6 }

// kernel: bert_embedding_model.17
= control target key start
LH: loop header
LB: loop body
LE: loop exit
PB: predicated region body
PF: predicated region fallthrough
CT: control target
= control target key end

     0   :  { %s456_s1 = inlined_call_operand.vmem [shape: bf16[256,128], index: 1, kind: input, shape index: {}]   ;;  %s457_s0 = inlined_call_operand.vmem [shape: bf16[16,256], index: 0, kind: input, shape index: {}]   ;;  %s458_s3 = inlined_call_operand.vmem [shape: bf16[16,128], index: 3, kind: input, shape index: {}]   ;;  %s459_s2 = inlined_call_operand.vmem [shape: f32[1,128], index: 2, kind: input, shape index: {}, may-alias: {2,5}]   ;;  %s460_s4 = inlined_call_operand.vmem [shape: f32[1,128], index: 4, kind: input, shape index: {}]   ;;  %s461_s5 = inlined_call_operand.vmem [shape: f32[1,128], index: 5, kind: input, shape index: {}, may-alias: {2,5}]   ;;  %s462_s6 = inlined_call_operand.vmem [shape: bf16[16,128], index: 6, kind: output, shape index: {}]  }
   0x1   :  { %v329_v0 = vld [vmem:[%s456_s1 + $0x78] sm:$0xff]   ;;  %v331_v2 = vld [vmem:[%s456_s1 + $0x70] sm:$0xff]   ;;  %v333_v4 = vld [vmem:[%s456_s1 + $0x68] sm:$0xff]  }
   0x2   :  { %v330_v1 = vld [vmem:[%s456_s1 + $0x38] sm:$0xff]   ;;  %307 = vmatprep.subr.bf16.mxu0 %v329_v0  ;;  %v332_v3 = vld [vmem:[%s456_s1 + $0x30] sm:$0xff]   ;;  %v334_v5 = vld [vmem:[%s456_s1 + $0x28] sm:$0xff]  }
   0x3   :  { %308 = vmatpush3.bf16.msra.mxu0 %v330_v1  ;;  %v335_v6 = vld [vmem:[%s456_s1 + $0x60] sm:$0xff]   ;;  %v337_v8 = vld [vmem:[%s456_s1 + $0x58] sm:$0xff]   ;;  %v339_v10 = vld [vmem:[%s456_s1 + $0x50] sm:$0xff]  }
   0x4   :  { %309 = vmatprep.subr.bf16.mxu0 %v331_v2  ;;  %v336_v7 = vld [vmem:[%s456_s1 + $0x20] sm:$0xff]   ;;  %v338_v9 = vld [vmem:[%s456_s1 + $0x18] sm:$0xff]   ;;  %v340_v12 = vld [vmem:[%s456_s1 + $0x10] sm:$0xff]  }
   0x5   :  { %v347_v11 = vld [vmem:[%s457_s0 + $0x4] ss:$8 sps:$4 sm:$0xff]   ;;  %v345_v17 = vld [vmem:[%s457_s0] ss:$8 sps:$4 sm:$0xff]  }
   0x6   :  { %203 = vmatprep.mubr.bf16.mxu0 %v347_v11  ;;  %v341_v13 = vld [vmem:[%s456_s1 + $0x48] sm:$0xff]   ;;  %v343_v15 = vld [vmem:[%s456_s1 + $0x40] sm:$0xff]  }
   0x7   :  { %310 = vmatpush3.bf16.msra.mxu0 %v332_v3  ;;  %v342_v14 = vld [vmem:[%s456_s1 + $0x8] sm:$0xff]   ;;  %v344_v16 = vld [vmem:[%s456_s1] sm:$0xff]  }
   0x8   :  { %311 = vmatprep.subr.bf16.mxu0 %v333_v4  ;;  %v299_v19 = vld [vmem:[%s458_s3] sm:$0xff]  }
   0x9   :  { %v273_v20 = vld [vmem:[%s459_s2] ss:$0 sm:$0xff]  ;;  %v300_v23 = vunpack.c.l.bf16 %v299_v19  ;;  %v301_v29 = vunpack.c.h.bf16 %v299_v19 }
   0xa   :  { %v292_v48 = vld [vmem:[%s460_s4] ss:$0 sm:$0xff] }
   0xb   :  { %312 = vmatpush3.bf16.msra.mxu0 %v334_v5  ;;  %v293_v52 = vld [vmem:[%s461_s5] ss:$0 sm:$0xff] }
   0xc   :  { %313 = vmatprep.subr.bf16.mxu0 %v335_v6 }
   0xf   :  { %314 = vmatpush3.bf16.msra.mxu0 %v336_v7 }
  0x10   :  { %315 = vmatprep.subr.bf16.mxu0 %v337_v8 }
  0x13   :  { %316 = vmatpush3.bf16.msra.mxu0 %v338_v9 }
  0x14   :  { %317 = vmatprep.subr.bf16.mxu0 %v339_v10 }
  0x17   :  { %318 = vmatpush3.bf16.msra.mxu0 %v340_v12 }
  0x18   :  { %319 = vmatprep.subr.bf16.mxu0 %v341_v13 }
  0x1b   :  { %320 = vmatpush3.bf16.msra.mxu0 %v342_v14 }
  0x1c   :  { %321 = vmatprep.subr.bf16.mxu0 %v343_v15 }
  0x1f   :  { %322 = vmatpush3.bf16.msra.mxu0 %v344_v16 }
  0x22   :  { %204 = vmatmul.mubr.bf16.vlgmr.msra.gmra.mxu0 %v345_v17 }
  0xe2   :  { %v323_v18 = vpop.f32.mrf.mxu0 }
  0xe4   :  { %v324_v21 = vpop.f32.mrf.mxu0 }
  0xe5   :  { %v325_v22 = vadd.f32 %v324_v21, %v323_v18 }
  0xe6   :  { %v326_v24 = vpop.f32.mrf.mxu0 }
  0xe7   :  { %v206_v25 = vadd.f32 %v325_v22, %v273_v20 }
  0xe8   :  { %v327_v26 = vpop.f32.mrf.mxu0 }
  0xe9   :  { %v328_v27 = vadd.f32 %v327_v26, %v326_v24  ;;  %v216_v28 = vadd.f32 %v300_v23, %v206_v25 }
  0xeb   :  { %v209_v30 = vadd.f32 %v328_v27, %v273_v20  ;;  %218 = vadd.xlane.f32.xlu0 %v216_v28 }
  0xed   :  { %v217_v31 = vadd.f32 %v301_v29, %v209_v30 }
  0xef   :  { %220 = vadd.xlane.f32.xlu0 %v217_v31 }
 0x174   :  { %v219_v32 = vpop.xlane.xlu0 %218 }
 0x175   :  { %v223_v33 = vmul.f32 0.0078125, %v219_v32 }
 0x177   :  { %v225_v34 = vsub.f32 %v216_v28, %v223_v33 }
 0x178   :  { %v221_v35 = vpop.xlane.xlu0 %220 }
 0x179   :  { %v224_v36 = vmul.f32 0.0078125, %v221_v35  ;;  %v227_v37 = vmul.f32 %v225_v34, %v225_v34 }
 0x17b   :  { %v226_v38 = vsub.f32 %v217_v31, %v224_v36  ;;  %229 = vadd.xlane.f32.xlu1 %v227_v37 }
 0x17d   :  { %v228_v39 = vmul.f32 %v226_v38, %v226_v38 }
 0x17f   :  { %231 = vadd.xlane.f32.xlu1 %v228_v39 }
 0x204   :  { %v230_v40 = vpop.xlane.xlu1 %229 }
 0x205   :  { %v233_v41 = vmul.f32 0.0078125, %v230_v40 }
 0x207   :  { %v235_v42 = vadd.f32 1e-12, %v233_v41 }
 0x208   :  { %v232_v43 = vpop.xlane.xlu1 %231 }
 0x209   :  { %348 = vrsqrt.f32 %v235_v42  ;;  %v234_v44 = vmul.f32 0.0078125, %v232_v43 }
 0x20b   :  { %v236_v45 = vadd.f32 1e-12, %v234_v44 }
 0x20d   :  { %350 = vrsqrt.f32 %v236_v45 }
 0x216   :  { %v349_v46 = vpop.eup %348 }
 0x217   :  { %v239_v47 = vmul.f32 %v349_v46, %v225_v34 }
 0x219   :  { %v248_v50 = vmul.f32 %v292_v48, %v239_v47 }
 0x21a   :  { %v351_v49 = vpop.eup %350 }
 0x21b   :  { %v240_v51 = vmul.f32 %v351_v49, %v226_v38  ;;  %v257_v54 = vadd.f32 %v293_v52, %v248_v50 }
 0x21d   :  { %v249_v53 = vmul.f32 %v292_v48, %v240_v51 }
 0x21f   :  { %v258_v55 = vadd.f32 %v293_v52, %v249_v53 }
 0x221   :  { %v305_v56 = vpack.c.bf16 %v258_v55, %v257_v54 }
 0x223   :  { %306 = vst [vmem:[%s462_s6] sm:$0xff] %v305_v56  }

// kernel: bert_embedding_model.23
= control target key start
LH: loop header
LB: loop body
LE: loop exit
PB: predicated region body
PF: predicated region fallthrough
CT: control target
= control target key end

     0   :  { %14 = vsyncpa [#allocation3], 0  ;;  %v587_v1 = vmov 0.0   ;;  %vm588_vm0 = vmmov 0   ;;  %s756_s0 = inlined_call_operand.vmem [shape: bf16[2,128], index: 0, kind: input, shape index: {}]   ;;  %s757_s1 = inlined_call_operand.vmem [shape: bf16[128,128], index: 1, kind: input, shape index: {}]   ;;  %s758_s2 = inlined_call_operand.vmem [shape: f32[1,128], index: 2, kind: input, shape index: {}, may-alias: {2,4,6}]   ;;  %s759_s3 = inlined_call_operand.vmem [shape: bf16[128,128], index: 3, kind: input, shape index: {}]   ;;  %s760_s4 = inlined_call_operand.vmem [shape: f32[1,128], index: 4, kind: input, shape index: {}, may-alias: {2,4,6}]   ;;  %s761_s5 = inlined_call_operand.vmem [shape: bf16[128,128], index: 5, kind: input, shape index: {}]   ;;  %s762_s6 = inlined_call_operand.vmem [shape: f32[1,128], index: 6, kind: input, shape index: {}, may-alias: {2,4,6}]   ;;  %s763_s7 = inlined_call_operand.hbm [shape: f32[2,128], index: 7, kind: output, shape index: {0}]   ;;  %s764_s8 = inlined_call_operand.hbm [shape: f32[2,128], index: 8, kind: output, shape index: {1}]  }
   0x1   :  { %v517_v0 = vld [vmem:[%s757_s1 + $0x38] sm:$0xff]   ;;  %453 = vmatprep.subr.bf16.mxu0 %v587_v1  ;;  %473 = vmatprep.subr.bf16.mxu1 %v587_v1  ;;  %v518_v2 = vld [vmem:[%s757_s1 + $0x30] sm:$0xff]   ;;  %v519_v3 = vld [vmem:[%s757_s1 + $0x28] sm:$0xff]  }
   0x2   :  { %454 = vmatpush3.bf16.msra.mxu0 %v517_v0  ;;  %469 = vmatprep.mubr.msk.bf16.mxu0 %vm588_vm0, %v587_v1  ;;  %v525_v4 = vld [vmem:[%s759_s3 + $0x38] sm:$0xff]   ;;  %v520_v5 = vld [vmem:[%s757_s1 + $0x20] sm:$0xff]   ;;  %v526_v6 = vld [vmem:[%s759_s3 + $0x30] sm:$0xff]  }
   0x3   :  { %455 = vmatprep.subr.bf16.mxu0 %v587_v1  ;;  %489 = vmatprep.mubr.msk.bf16.mxu1 %vm588_vm0, %v587_v1  ;;  %v521_v7 = vld [vmem:[%s757_s1 + $0x18] sm:$0xff]   ;;  %v527_v8 = vld [vmem:[%s759_s3 + $0x28] sm:$0xff]   ;;  %v522_v9 = vld [vmem:[%s757_s1 + $0x10] sm:$0xff]  }
   0x4   :  { %474 = vmatpush3.bf16.msra.mxu1 %v525_v4 }
   0x5   :  { %475 = vmatprep.subr.bf16.mxu1 %v587_v1 }
   0x6   :  { %456 = vmatpush3.bf16.msra.mxu0 %v518_v2 }
   0x7   :  { %457 = vmatprep.subr.bf16.mxu0 %v587_v1 }
   0x8   :  { %476 = vmatpush3.bf16.msra.mxu1 %v526_v6 }
   0x9   :  { %477 = vmatprep.subr.bf16.mxu1 %v587_v1 }
   0xa   :  { %458 = vmatpush3.bf16.msra.mxu0 %v519_v3 }
   0xb   :  { %459 = vmatprep.subr.bf16.mxu0 %v587_v1 }
   0xc   :  { %478 = vmatpush3.bf16.msra.mxu1 %v527_v8 }
   0xd   :  { %479 = vmatprep.subr.bf16.mxu1 %v587_v1 }
   0xe   :  { %460 = vmatpush3.bf16.msra.mxu0 %v520_v5 }
   0xf   :  { %461 = vmatprep.subr.bf16.mxu0 %v587_v1 }
  0x12   :  { %462 = vmatpush3.bf16.msra.mxu0 %v521_v7 }
  0x13   :  { %463 = vmatprep.subr.bf16.mxu0 %v587_v1 }
  0x14   :  { %15 = vsyncpa [#allocation5], 0  ;;  %v523_v10 = vld [vmem:[%s757_s1 + $0x8] sm:$0xff]   ;;  %v524_v11 = vld [vmem:[%s757_s1] sm:$0xff]  }
  0x15   :  { %v31_v12 = vld [vmem:[%s756_s0] sm:$0x1]  ;;  %v529_v14 = vld [vmem:[%s759_s3 + $0x18] sm:$0xff]   ;;  %v530_v15 = vld [vmem:[%s759_s3 + $0x10] sm:$0xff]   ;;  %s589_s0 = smov [#allocation2]  }
  0x16   :  { %464 = vmatpush3.bf16.msra.mxu0 %v522_v9  ;;  %v528_v13 = vld [vmem:[%s759_s3 + $0x20] sm:$0xff]   ;;  %v531_v16 = vld [vmem:[%s759_s3 + $0x8] sm:$0xff]   ;;  %v533_v18 = vld [vmem:[%s761_s5 + $0x38] sm:$0xff]   ;;  %s377_s10 = sshll.u32 %s589_s0, 4  ;;  %s378_s10 = int_to_ptr.vmem [resolvable:$true] %s377_s10 }
  0x17   :  { %465 = vmatprep.subr.bf16.mxu0 %v587_v1  ;;  %480 = vmatpush3.bf16.msra.mxu1 %v528_v13  ;;  %v532_v17 = vld [vmem:[%s759_s3] sm:$0xff]   ;;  %v534_v19 = vld [vmem:[%s761_s5 + $0x30] sm:$0xff]   ;;  %v535_v20 = vld [vmem:[%s761_s5 + $0x28] sm:$0xff]   ;;  %s543_s11 = scalar_lea.vmem %s378_s10, 32  ;;  %p548_p1 = scmp.lt.s32.totalorder %s378_s10, %s378_s10 }
  0x18   :  { %481 = vmatprep.subr.bf16.mxu1 %v587_v1  ;;  %v536_v21 = vld [vmem:[%s761_s5 + $0x20] sm:$0xff]   ;;  %v537_v22 = vld [vmem:[%s761_s5 + $0x18] sm:$0xff]   ;;  %v538_v23 = vld [vmem:[%s761_s5 + $0x10] sm:$0xff]   ;;  %p544_p0 = scmp.ne.s32.totalorder %s378_s10, %s543_s11  ;;  %p549_p2 = scmp.lt.s32.totalorder %s543_s11, %s543_s11 }
  0x19   :  { %v399_v24 = vld [vmem:[%s758_s2] ss:$0 sm:$0xff]  ;;  %v539_v32 = vld [vmem:[%s761_s5 + $0x8] sm:$0xff]  }
  0x1a   :  { %466 = vmatpush3.bf16.msra.mxu0 %v523_v10  ;;  %v540_v33 = vld [vmem:[%s761_s5] sm:$0xff]   ;;  %p550_p3 = por %p549_p2, %p548_p1 }
  0x1b   :  { %467 = vmatprep.subr.bf16.mxu0 %v587_v1  ;;  %482 = vmatpush3.bf16.msra.mxu1 %v529_v14  ;;  %v408_v34 = vld [vmem:[%s760_s4] ss:$0 sm:$0xff] }
  0x1c   :  { %483 = vmatprep.subr.bf16.mxu1 %v587_v1  ;;  %p551_p4 = pnand %p550_p3, %p544_p0 }
  0x1e   :  { %468 = vmatpush3.bf16.msra.mxu0 %v524_v11 }
  0x1f   :  { %493 = vmatprep.subr.bf16.mxu0 %v587_v1  ;;  %484 = vmatpush3.bf16.msra.mxu1 %v530_v15 }
  0x20   :  { %485 = vmatprep.subr.bf16.mxu1 %v587_v1 }
  0x21   :  { %470 = vmatmul.mubr.bf16.vlgmr.msra.gmra.mxu0 %v31_v12 }
  0x22   :  { %509 = vmatprep.mubr.msk.bf16.mxu0 %vm588_vm0, %v587_v1  ;;  %494 = vmatpush3.bf16.msra.mxu0 %v533_v18 }
  0x23   :  { %486 = vmatpush3.bf16.msra.mxu1 %v531_v16  ;;  %495 = vmatprep.subr.bf16.mxu0 %v587_v1 }
  0x24   :  { %487 = vmatprep.subr.bf16.mxu1 %v587_v1 }
  0x26   :  { %496 = vmatpush3.bf16.msra.mxu0 %v534_v19 }
  0x27   :  { %488 = vmatpush3.bf16.msra.mxu1 %v532_v17  ;;  %497 = vmatprep.subr.bf16.mxu0 %v587_v1 }
  0x2a   :  { %498 = vmatpush3.bf16.msra.mxu0 %v535_v20 }
  0x2b   :  { %499 = vmatprep.subr.bf16.mxu0 %v587_v1 }
  0x2e   :  { %500 = vmatpush3.bf16.msra.mxu0 %v536_v21 }
  0x2f   :  { %501 = vmatprep.subr.bf16.mxu0 %v587_v1 }
  0x32   :  { %502 = vmatpush3.bf16.msra.mxu0 %v537_v22 }
  0x33   :  { %503 = vmatprep.subr.bf16.mxu0 %v587_v1 }
  0x36   :  { %504 = vmatpush3.bf16.msra.mxu0 %v538_v23 }
  0x37   :  { %505 = vmatprep.subr.bf16.mxu0 %v587_v1 }
  0x3a   :  { %506 = vmatpush3.bf16.msra.mxu0 %v539_v32 }
  0x3b   :  { %507 = vmatprep.subr.bf16.mxu0 %v587_v1 }
  0x3e   :  { %508 = vmatpush3.bf16.msra.mxu0 %v540_v33 }
  0xe1   :  { %v137_v25 = vpop.f32.mrf.mxu0 }
  0xe2   :  { %v138_v26 = vadd.f32 %v399_v24, %v137_v25 }
  0xe3   :  { %v471_v27 = vpop.f32.mrf.mxu0 }
  0xe4   :  { %541 = vtanh.f32 %v138_v26 }
  0xe5   :  { %v140_v28 = vpop.f32.mrf.mxu0 }
  0xe7   :  { %v472_v29 = vpop.f32.mrf.mxu0 }
  0xf1   :  { %v542_v30 = vpop.eup %541 }
  0xf2   :  { %144 = vst [vmem:[#allocation2] sm:$0x3] %v542_v30  ;;  %v145_v31 = vpack.c.bf16 %v542_v30, %v542_v30 }
  0xf4   :  { %490 = vmatmul.mubr.bf16.vlgmr.msra.gmra.mxu1 %v145_v31 }
 0x1b4   :  { %v251_v35 = vpop.f32.mrf.mxu1 }
 0x1b5   :  { %v252_v36 = vadd.f32 %v408_v34, %v251_v35 }
 0x1b6   :  { %v491_v37 = vpop.f32.mrf.mxu1 }
 0x1b7   :  { %v257_v38 = vmax.f32 %v252_v36, 0.0 }
 0x1b8   :  { %v254_v39 = vpop.f32.mrf.mxu1 }
 0x1b9   :  { %v258_v40 = vpack.c.bf16 %v257_v38, %v257_v38 }
 0x1ba   :  { %v492_v41 = vpop.f32.mrf.mxu1 }
 0x1bb   :  { %510 = vmatmul.mubr.bf16.vlgmr.msra.gmra.mxu0 %v258_v40 }
 0x1bc   :  { %554 = shalt.err (!%p551_p4)
}
 0x1bd   :  { %380 = dma.vmem_to_hbm [thread:$0]  %s378_s10, 32, %s763_s7, [#allocation3]   ;;  %v417_v42 = vld [vmem:[%s762_s6] ss:$0 sm:$0xff] }
 0x1be   :  { %s590_s14 = smov [#allocation4]  }
 0x1bf   :  { %s387_s15 = sshll.u32 %s590_s14, 4  ;;  %s388_s15 = int_to_ptr.vmem [resolvable:$true] %s387_s15 }
 0x1c0   :  { %s563_s16 = scalar_lea.vmem %s388_s15, 32  ;;  %p568_p6 = scmp.lt.s32.totalorder %s388_s15, %s388_s15 }
 0x1c1   :  { %p564_p5 = scmp.ne.s32.totalorder %s388_s15, %s563_s16  ;;  %p569_p7 = scmp.lt.s32.totalorder %s563_s16, %s563_s16 }
 0x1c3   :  { %p570_p8 = por %p569_p7, %p568_p6 }
 0x1c5   :  { %p571_p9 = pnand %p570_p8, %p564_p5 }
 0x27b   :  { %v364_v43 = vpop.f32.mrf.mxu0 }
 0x27c   :  { %v365_v44 = vadd.f32 %v417_v42, %v364_v43 }
 0x27d   :  { %v511_v45 = vpop.f32.mrf.mxu0 }
 0x27e   :  { %370 = vst [vmem:[#allocation4] sm:$0x3] %v365_v44 }
 0x27f   :  { %v367_v46 = vpop.f32.mrf.mxu0 }
 0x280   :  { %574 = shalt.err (!%p571_p9)
}
 0x281   :  { %390 = dma.vmem_to_hbm [thread:$0]  %s388_s15, 32, %s764_s8, [#allocation5]   ;;  %v512_v47 = vpop.f32.mrf.mxu0 }
 0x282   :  { %583 = dma.done.wait [#allocation3], 32  }
 0x283   :  { %584 = vsyncadd [#allocation3], 4294967264 }
 0x284   :  { %585 = dma.done.wait [#allocation5], 32  }
 0x285   :  { %586 = vsyncadd [#allocation5], 4294967264 }
 0x286   :  { %397 = vsyncpa [#allocation3], 1 }
 0x287   :  { %398 = vsyncpa [#allocation5], 1 }

</bundles_post_ra>
